<compile_context>
chip_gen: v7x
topology: tpu7x:2x2x1
jax: 0.10.0
libtpu: 0.0.40
codegen_flags: <defaults>
</compile_context>

<pallas_src>
import functools

import jax
import jax.numpy as jnp
from jax.experimental import pallas as pl
from jax.experimental.pallas import tpu as pltpu


def _round_up(x, m):
    return (x + m - 1) // m * m


# ----------------------------------------------------------------------------
# Fused Pallas kernel: downsample-conv + 5 residual blocks + upsample-conv
# + global residual add + clip, all in VMEM.  Works on one batch element with
# channels on sublanes and spatial (S = H/4 * W/4, flattened) on lanes.
# ----------------------------------------------------------------------------
def _feqe_kernel(xu_ref, wd_ref, bd_ref, wb1_ref, bb1_ref, wb2_ref, bb2_ref,
                 wu_ref, bu_ref, o_ref, pad_ref, tap_ref, *,
                 W4, S, C, n_blocks, PL, PR):
    f32 = jnp.float32

    # Column-validity masks for the horizontal taps (spatial on lanes).
    # Hoisted once at full (C, S) so no broadcast is re-materialised inside
    # the conv loops.
    col = jax.lax.broadcasted_iota(jnp.int32, (C, S), 1) % W4
    mask_l = (col >= 1).astype(f32)        # tap reads column w-1
    mask_r = (col <= W4 - 2).astype(f32)   # tap reads column w+1

    # Zero only the halo lanes, once; the interior is fully overwritten by
    # every conv3x3 call so the halos stay zero for the whole invocation.
    pad_ref[:, 0:PL] = jnp.zeros((C, PL), f32)
    pad_ref[:, PL + S:PL + S + PR] = jnp.zeros((C, PR), f32)

    # Folded downsample: per-pixel affine 48 -> C on the unshuffle-by-4 input.
    feat = (jnp.dot(wd_ref[...], xu_ref[0].astype(f32),
                    preferred_element_type=f32)
            + bd_ref[...])                                        # (C, S)

    def conv3x3(inp, w, b):
        # Gather the 9 spatially shifted taps into a (9C, S) matrix.  Tap
        # stores land at sublane offsets t*C (multiple of 8) over the full
        # lane width (unmasked vst); the conv is then a single MXU matmul
        # with N = S on the lane axis.
        pad_ref[:, PL:PL + S] = inp
        for ky in range(3):
            for kx in range(3):
                t = ky * 3 + kx
                shift = (ky - 1) * W4 + (kx - 1)
                tap = pad_ref[:, PL + shift:PL + shift + S]
                if kx == 0:
                    tap = tap * mask_l
                elif kx == 2:
                    tap = tap * mask_r
                tap_ref[t * C:(t + 1) * C, :] = tap
        return jnp.dot(w, tap_ref[...], preferred_element_type=f32) + b

    def instance_norm(y):
        # InstanceNorm2d(affine=False): per-channel stats over spatial
        # (biased variance, eps=1e-5).  Spatial is the lane axis -> cheap
        # lane reductions.
        mean = jnp.mean(y, axis=-1, keepdims=True)
        var = jnp.mean(jnp.square(y - mean), axis=-1, keepdims=True)
        return (y - mean) * jax.lax.rsqrt(var + 1e-5)

    def block_body(blk, feat):
        h = conv3x3(feat, wb1_ref[blk], bb1_ref[blk])
        h = jnp.maximum(h, 0.0)             # ReLU
        h = instance_norm(h)
        h = conv3x3(h, wb2_ref[blk], bb2_ref[blk])
        h = instance_norm(h)
        return feat + h                     # block residual

    # fori_loop (not a Python unroll): bounds live ranges and instruction
    # footprint; per-block weights are fetched by dynamic leading-axis index.
    feat = jax.lax.fori_loop(0, n_blocks, block_body, feat)

    # Folded upsample: per-pixel affine C -> 48 (unshuffle-by-4 output image).
    out = (jnp.dot(wu_ref[...], feat, preferred_element_type=f32)
           + bu_ref[...])                                         # (48, S)

    # Global residual + clip.  Re-read the input block (already resident in
    # VMEM) instead of keeping it live across all 10 convs.
    o_ref[0] = jnp.clip(xu_ref[0].astype(f32) + out,
                        0.0, 1.0).astype(o_ref.dtype)


def feqe_fused(xu, wd, bd, wb1, bb1, wb2, bb2, wu, bu, *, W4):
    B, C48, S = xu.shape
    n_blocks, C, _ = wb1.shape
    PL = _round_up(W4 + 1, 128)   # lane-aligned left halo
    PR = W4 + 1

    # Rough VMEM budget (f32, lane-padded) with headroom, passed explicitly
    # so Mosaic does not fall back to the scoped default (32 MiB v7x / 16 MiB
    # v5e).
    s_lanes = _round_up(S, 128)
    io_bytes = 2 * 2 * C48 * s_lanes * 4                       # in+out, 2x buf
    scratch_bytes = (C * _round_up(PL + S + PR, 128) + 9 * C * s_lanes) * 4
    w_bytes = 4 * 4 * (C * 128 + 2 * n_blocks * C * _round_up(9 * C, 128)
                       + 2 * C48 * 128)
    vmem_limit = int(min(max(1.5 * (io_bytes + scratch_bytes + w_bytes),
                             8 << 20), 48 << 20))

    # TODO(synk): for very large images, add an S-band grid axis (requires a
    # cross-band two-pass InstanceNorm) to stay under v7x's 64 MiB / v5e's
    # 16 MiB VMEM; at that point also revisit bf16 matmul operands.
    kernel = functools.partial(_feqe_kernel, W4=W4, S=S, C=C,
                               n_blocks=n_blocks, PL=PL, PR=PR)
    return pl.pallas_call(
        kernel,
        out_shape=jax.ShapeDtypeStruct((B, C48, S), xu.dtype),
        grid=(B,),
        in_specs=[
            pl.BlockSpec((1, C48, S), lambda b: (b, 0, 0)),
            pl.BlockSpec((C, C48), lambda b: (0, 0)),
            pl.BlockSpec((C, 1), lambda b: (0, 0)),
            pl.BlockSpec((n_blocks, C, 9 * C), lambda b: (0, 0, 0)),
            pl.BlockSpec((n_blocks, C, 1), lambda b: (0, 0, 0)),
            pl.BlockSpec((n_blocks, C, 9 * C), lambda b: (0, 0, 0)),
            pl.BlockSpec((n_blocks, C, 1), lambda b: (0, 0, 0)),
            pl.BlockSpec((C48, C), lambda b: (0, 0)),
            pl.BlockSpec((C48, 1), lambda b: (0, 0)),
        ],
        out_specs=pl.BlockSpec((1, C48, S), lambda b: (b, 0, 0)),
        scratch_shapes=[
            pltpu.VMEM((C, PL + S + PR), jnp.float32),   # lane-haloed line buf
            pltpu.VMEM((9 * C, S), jnp.float32),         # (9C, S) tap matrix
        ],
        compiler_params=pltpu.CompilerParams(
            dimension_semantics=("parallel",),           # batch across v7x TCs
            vmem_limit_bytes=vmem_limit),
    )(xu, wd, bd, wb1, bb1, wb2, bb2, wu, bu)


# ----------------------------------------------------------------------------
# Pixel shuffle / unshuffle (NHWC, channel ordering matches torch)
# ----------------------------------------------------------------------------
def pixel_unshuffle_nhwc(x, r):
    B, H, W, C = x.shape
    x = x.reshape(B, H // r, r, W // r, r, C)
    x = x.transpose(0, 1, 3, 5, 2, 4)           # (B, H/r, W/r, C, i, j)
    return x.reshape(B, H // r, W // r, C * r * r)


def pixel_shuffle_nhwc(x, r):
    B, H, W, C = x.shape
    c = C // (r * r)
    x = x.reshape(B, H, W, c, r, r)             # (B, H, W, c, i, j)
    x = x.transpose(0, 1, 4, 2, 5, 3)           # (B, H, i, W, j, c)
    return x.reshape(B, H * r, W * r, c)


# ----------------------------------------------------------------------------
# Fold shuffle+1x1-conv stacks into per-pixel affine maps by probing the
# exact reference composite with basis vectors (done once at setup).
# ----------------------------------------------------------------------------
def _ref_downsample(x_nhwc, w_down, b_down):
    u = pixel_unshuffle_nhwc(x_nhwc, 2)
    m = u @ w_down + b_down
    return pixel_unshuffle_nhwc(m, 2)


def _ref_upsample(f_nhwc, w1, b1, w2, b2):
    a = f_nhwc @ w1 + b1
    a = pixel_shuffle_nhwc(a, 2)
    d = a @ w2 + b2
    return pixel_shuffle_nhwc(d, 2)


def _fold_downsample(w_down, b_down, C):
    zero = jnp.zeros((1, 4, 4, 3), jnp.float32)
    b_eff = _ref_downsample(zero, w_down, b_down).reshape(1, C)
    basis = pixel_shuffle_nhwc(
        jnp.eye(48, dtype=jnp.float32).reshape(48, 1, 1, 48), 4)   # (48,4,4,3)
    w_eff = _ref_downsample(basis, w_down, b_down).reshape(48, C) - b_eff
    return w_eff, b_eff


def _fold_upsample(w1, b1, w2, b2, C):
    zero = jnp.zeros((1, 1, 1, C), jnp.float32)
    b_eff = pixel_unshuffle_nhwc(
        _ref_upsample(zero, w1, b1, w2, b2), 4).reshape(1, 48)
    basis = jnp.eye(C, dtype=jnp.float32).reshape(C, 1, 1, C)
    w_eff = pixel_unshuffle_nhwc(
        _ref_upsample(basis, w1, b1, w2, b2), 4).reshape(C, 48) - b_eff
    return w_eff, b_eff


def prepare_params(params, channels=16):
    C = channels
    wd, bd = _fold_downsample(params["w_down"], params["b_down"], C)  # (48,C),(1,C)
    wu, bu = _fold_upsample(params["w_up1"], params["b_up1"],
                            params["w_up2"], params["b_up2"], C)      # (C,48),(1,48)
    # Conv weights laid out for dot(W (C, 9C), taps (9C, S)); tap row order
    # is (ky, kx, cin).
    wb1 = jnp.stack([w1.reshape(9 * C, C).T for (w1, _, _, _) in params["blocks"]])
    wb2 = jnp.stack([w2.reshape(9 * C, C).T for (_, _, w2, _) in params["blocks"]])
    bb1 = jnp.stack([b1.reshape(C, 1) for (_, b1, _, _) in params["blocks"]])
    bb2 = jnp.stack([b2.reshape(C, 1) for (_, _, _, b2) in params["blocks"]])
    return {"wd": wd.T, "bd": bd.T,            # (C,48), (C,1)
            "wb1": wb1, "bb1": bb1, "wb2": wb2, "bb2": bb2,
            "wu": wu.T, "bu": bu.T}            # (48,C), (48,1)


# ----------------------------------------------------------------------------
# Parameters (deterministic synthetic init; shapes follow the PyTorch module)
# ----------------------------------------------------------------------------
def init_params(key, channels=16, num_residual_blocks=5):
    def conv_w(k, shape, fan_in):
        return (jax.random.normal(k, shape, jnp.float32) /
                jnp.sqrt(fan_in)).astype(jnp.float32)

    n_keys = 8 + 4 * num_residual_blocks
    keys = iter(jax.random.split(key, n_keys))
    p = {}
    # downsample: Conv2d(12, channels//4, 1)
    p["w_down"] = conv_w(next(keys), (12, channels // 4), 12)
    p["b_down"] = 0.01 * jax.random.normal(next(keys), (1, channels // 4), jnp.float32)
    # residual blocks: Conv2d(channels, channels, 3) x2 each
    blocks = []
    for _ in range(num_residual_blocks):
        w1 = conv_w(next(keys), (3, 3, channels, channels), 9 * channels)
        b1 = 0.01 * jax.random.normal(next(keys), (1, channels), jnp.float32)
        w2 = conv_w(next(keys), (3, 3, channels, channels), 9 * channels)
        b2 = 0.01 * jax.random.normal(next(keys), (1, channels), jnp.float32)
        blocks.append((w1, b1, w2, b2))
    p["blocks"] = blocks
    # upsample: Conv2d(channels, channels*4, 1), Conv2d(channels, 12, 1)
    p["w_up1"] = conv_w(next(keys), (channels, channels * 4), channels)
    p["b_up1"] = 0.01 * jax.random.normal(next(keys), (1, channels * 4), jnp.float32)
    p["w_up2"] = conv_w(next(keys), (channels, 12), channels)
    p["b_up2"] = 0.01 * jax.random.normal(next(keys), (1, 12), jnp.float32)
    return p


# ----------------------------------------------------------------------------
# Full forward pass (input/output NCHW like the PyTorch module)
# ----------------------------------------------------------------------------
def feqe_forward(x_nchw, prep):
    x = jnp.transpose(x_nchw, (0, 2, 3, 1))                 # NCHW -> NHWC
    B, H, W, Cin = x.shape
    H4, W4 = H // 4, W // 4
    S = H4 * W4
    # Layout plumbing only: present a (B, 48, S) unshuffled-by-4 slab with
    # channels on sublanes and spatial on lanes (lane-dense for realistic S).
    xu = jnp.transpose(pixel_unshuffle_nhwc(x, 4).reshape(B, S, Cin * 16),
                       (0, 2, 1))
    y48 = feqe_fused(xu, prep["wd"], prep["bd"], prep["wb1"], prep["bb1"],
                     prep["wb2"], prep["bb2"], prep["wu"], prep["bu"], W4=W4)
    y = pixel_shuffle_nhwc(
        jnp.transpose(y48, (0, 2, 1)).reshape(B, H4, W4, Cin * 16), 4)
    return jnp.transpose(y, (0, 3, 1, 2))                   # NHWC -> NCHW


# ----------------------------------------------------------------------------
if __name__ == "__main__":
    key = jax.random.PRNGKey(0)
    k_param, k_input = jax.random.split(key)

    channels, n_blocks = 16, 5
    params = init_params(k_param, channels=channels, num_residual_blocks=n_blocks)
    prep = prepare_params(params, channels=channels)

    x = jax.random.uniform(k_input, (2, 3, 16, 16), jnp.float32)  # NCHW in [0,1]

    fwd = jax.jit(lambda inp: feqe_forward(inp, prep))
    y = jax.block_until_ready(fwd(x))

    assert y.shape == (2, 3, 16, 16), y.shape
    assert y.dtype == jnp.float32
    assert bool(jnp.all(jnp.isfinite(y)))
    assert bool(jnp.all(y >= 0.0)) and bool(jnp.all(y <= 1.0))
    print("KERNEL_OK")
</pallas_src>

<mosaic_0001>
module attributes {stable_mosaic.version = 11 : i64} {
  func.func @_feqe_kernel(%arg0: i32, %arg1: memref<1x48x16xf32, #tpu.memory_space<vmem>>, %arg2: memref<16x48xf32, #tpu.memory_space<vmem>>, %arg3: memref<16x1xf32, #tpu.memory_space<vmem>>, %arg4: memref<5x16x144xf32, #tpu.memory_space<vmem>>, %arg5: memref<5x16x1xf32, #tpu.memory_space<vmem>>, %arg6: memref<5x16x144xf32, #tpu.memory_space<vmem>>, %arg7: memref<5x16x1xf32, #tpu.memory_space<vmem>>, %arg8: memref<48x16xf32, #tpu.memory_space<vmem>>, %arg9: memref<48x1xf32, #tpu.memory_space<vmem>>, %arg10: memref<1x48x16xf32, #tpu.memory_space<vmem>>, %arg11: memref<16x149xf32, #tpu.memory_space<vmem>>, %arg12: memref<144x16xf32, #tpu.memory_space<vmem>>) attributes {dimension_semantics = [#tpu.dimension_semantics<parallel>], iteration_bounds = array<i64: 2>, scalar_prefetch = 0 : i64, scratch_operands = 2 : i64, tpu.core_type = #tpu.core_type<tc>, window_params = [{transform_indices = @transform_0, window_bounds = array<i64: 1, 48, 16>}, {pipeline_mode = #tpu.pipeline_mode<synchronous>, transform_indices = @transform_1, window_bounds = array<i64: 16, 48>}, {pipeline_mode = #tpu.pipeline_mode<synchronous>, transform_indices = @transform_2, window_bounds = array<i64: 16, 1>}, {pipeline_mode = #tpu.pipeline_mode<synchronous>, transform_indices = @transform_3, window_bounds = array<i64: 5, 16, 144>}, {pipeline_mode = #tpu.pipeline_mode<synchronous>, transform_indices = @transform_4, window_bounds = array<i64: 5, 16, 1>}, {pipeline_mode = #tpu.pipeline_mode<synchronous>, transform_indices = @transform_5, window_bounds = array<i64: 5, 16, 144>}, {pipeline_mode = #tpu.pipeline_mode<synchronous>, transform_indices = @transform_6, window_bounds = array<i64: 5, 16, 1>}, {pipeline_mode = #tpu.pipeline_mode<synchronous>, transform_indices = @transform_7, window_bounds = array<i64: 48, 16>}, {pipeline_mode = #tpu.pipeline_mode<synchronous>, transform_indices = @transform_8, window_bounds = array<i64: 48, 1>}, {transform_indices = @transform_9, window_bounds = array<i64: 1, 48, 16>}]} {
    %0 = tpu.iota {dimensions = array<i32: 1>} : vector<16x16xi32>
    %c4_i32 = arith.constant 4 : i32
    %c0_i32 = arith.constant 0 : i32
    %1 = arith.cmpi eq, %c4_i32, %c0_i32 : i32
    %c1_i32 = arith.constant 1 : i32
    %2 = arith.select %1, %c1_i32, %c4_i32 : i32
    %3 = vector.broadcast %2 : i32 to vector<16x16xi32>
    %4 = arith.remsi %0, %3 : vector<16x16xi32>
    %c0_i32_0 = arith.constant 0 : i32
    %5 = vector.broadcast %c0_i32_0 : i32 to vector<16x16xi32>
    %6 = arith.cmpi ne, %4, %5 : vector<16x16xi32>
    %c0_i32_1 = arith.constant 0 : i32
    %7 = vector.broadcast %c0_i32_1 : i32 to vector<16x16xi32>
    %8 = arith.cmpi slt, %4, %7 : vector<16x16xi32>
    %c0_i32_2 = arith.constant 0 : i32
    %9 = arith.cmpi slt, %2, %c0_i32_2 : i32
    %10 = vector.broadcast %9 : i1 to vector<16x16xi1>
    %11 = vector.broadcast %10 : vector<16x16xi1> to vector<16x16xi1>
    %12 = arith.xori %8, %11 : vector<16x16xi1>
    %13 = arith.andi %12, %6 : vector<16x16xi1>
    %14 = vector.broadcast %2 : i32 to vector<16x16xi32>
    %15 = arith.addi %4, %14 : vector<16x16xi32>
    %16 = arith.select %13, %15, %4 : vector<16x16xi1>, vector<16x16xi32>
    %c1_i32_3 = arith.constant 1 : i32
    %17 = vector.broadcast %c1_i32_3 : i32 to vector<16x16xi32>
    %18 = arith.cmpi sge, %16, %17 : vector<16x16xi32>
    %19 = arith.extui %18 : vector<16x16xi1> to vector<16x16xi32>
    %20 = arith.sitofp %19 : vector<16x16xi32> to vector<16x16xf32>
    %c2_i32 = arith.constant 2 : i32
    %21 = vector.broadcast %c2_i32 : i32 to vector<16x16xi32>
    %22 = arith.cmpi sle, %16, %21 : vector<16x16xi32>
    %23 = arith.extui %22 : vector<16x16xi1> to vector<16x16xi32>
    %24 = arith.sitofp %23 : vector<16x16xi32> to vector<16x16xf32>
    %cst = arith.constant 0.000000e+00 : f32
    %25 = vector.broadcast %cst : f32 to vector<16x128xf32>
    %c0 = arith.constant 0 : index
    %c0_4 = arith.constant 0 : index
    %26 = vector.load %arg11[%c0, %c0_4] : memref<16x149xf32, #tpu.memory_space<vmem>>, vector<16x128xf32>
    tpu.vector_store %arg11[%c0, %c0_4], %25 {strides = array<i32>} : memref<16x149xf32, #tpu.memory_space<vmem>>, vector<16x128xf32>,
    %cst_5 = arith.constant 0.000000e+00 : f32
    %27 = vector.broadcast %cst_5 : f32 to vector<16x5xf32>
    %c0_6 = arith.constant 0 : index
    %c144 = arith.constant 144 : index
    %28 = vector.load %arg11[%c0_6, %c144] : memref<16x149xf32, #tpu.memory_space<vmem>>, vector<16x5xf32>
    tpu.vector_store %arg11[%c0_6, %c144], %27 {strides = array<i32>} : memref<16x149xf32, #tpu.memory_space<vmem>>, vector<16x5xf32>,
    %c0_7 = arith.constant 0 : index
    %c0_8 = arith.constant 0 : index
    %29 = vector.load %arg2[%c0_7, %c0_8] : memref<16x48xf32, #tpu.memory_space<vmem>>, vector<16x48xf32>
    %c0_9 = arith.constant 0 : index
    %c0_10 = arith.constant 0 : index
    %c0_11 = arith.constant 0 : index
    %30 = vector.load %arg1[%c0_9, %c0_10, %c0_11] : memref<1x48x16xf32, #tpu.memory_space<vmem>>, vector<1x48x16xf32>
    %31 = vector.shape_cast %30 : vector<1x48x16xf32> to vector<48x16xf32>
    %cst_12 = arith.constant dense<0.000000e+00> : vector<16x16xf32>
    %32 = tpu.matmul %29, %31, %cst_12 {dimension_numbers = #tpu.dot_dimension_numbers<[1], [0], [0], [1], [0, 0, 1, 1], [], []>} : vector<16x48xf32>, vector<48x16xf32>, vector<16x16xf32> -> vector<16x16xf32>
    %c0_13 = arith.constant 0 : index
    %c0_14 = arith.constant 0 : index
    %33 = vector.load %arg3[%c0_13, %c0_14] : memref<16x1xf32, #tpu.memory_space<vmem>>, vector<16x1xf32>
    %34 = vector.broadcast %33 : vector<16x1xf32> to vector<16x16xf32>
    %35 = arith.addf %32, %34 : vector<16x16xf32>
    %c0_i32_15 = arith.constant 0 : i32
    %c5_i32 = arith.constant 5 : i32
    %36 = arith.addi %c0_i32_15, %c5_i32 : i32
    %c1_i32_16 = arith.constant 1 : i32
    %37 = scf.for %arg13 = %c0_i32_15 to %36 step %c1_i32_16 iter_args(%arg14 = %35) -> (vector<16x16xf32>)  : i32 {
      %53 = arith.index_cast %arg13 : i32 to index
      %c0_31 = arith.constant 0 : index
      %c0_32 = arith.constant 0 : index
      %54 = vector.load %arg4[%53, %c0_31, %c0_32] : memref<5x16x144xf32, #tpu.memory_space<vmem>>, vector<1x16x144xf32>
      %55 = vector.shape_cast %54 : vector<1x16x144xf32> to vector<16x144xf32>
      %56 = arith.index_cast %arg13 : i32 to index
      %c0_33 = arith.constant 0 : index
      %c0_34 = arith.constant 0 : index
      %57 = vector.load %arg5[%56, %c0_33, %c0_34] : memref<5x16x1xf32, #tpu.memory_space<vmem>>, vector<1x16x1xf32>
      %58 = vector.shape_cast %57 : vector<1x16x1xf32> to vector<16x1xf32>
      %c0_35 = arith.constant 0 : index
      %c128 = arith.constant 128 : index
      %59 = vector.load %arg11[%c0_35, %c128] : memref<16x149xf32, #tpu.memory_space<vmem>>, vector<16x16xf32>
      tpu.vector_store %arg11[%c0_35, %c128], %arg14 {strides = array<i32>} : memref<16x149xf32, #tpu.memory_space<vmem>>, vector<16x16xf32>,
      %c0_36 = arith.constant 0 : index
      %c123 = arith.constant 123 : index
      %60 = vector.load %arg11[%c0_36, %c123] : memref<16x149xf32, #tpu.memory_space<vmem>>, vector<16x16xf32>
      %61 = arith.mulf %60, %20 : vector<16x16xf32>
      %c0_37 = arith.constant 0 : index
      %c0_38 = arith.constant 0 : index
      %62 = vector.load %arg12[%c0_37, %c0_38] : memref<144x16xf32, #tpu.memory_space<vmem>>, vector<16x16xf32>
      tpu.vector_store %arg12[%c0_37, %c0_38], %61 {strides = array<i32>} : memref<144x16xf32, #tpu.memory_space<vmem>>, vector<16x16xf32>,
      %c0_39 = arith.constant 0 : index
      %c124 = arith.constant 124 : index
      %63 = vector.load %arg11[%c0_39, %c124] : memref<16x149xf32, #tpu.memory_space<vmem>>, vector<16x16xf32>
      %c16 = arith.constant 16 : index
      %c0_40 = arith.constant 0 : index
      %64 = vector.load %arg12[%c16, %c0_40] : memref<144x16xf32, #tpu.memory_space<vmem>>, vector<16x16xf32>
      tpu.vector_store %arg12[%c16, %c0_40], %63 {strides = array<i32>} : memref<144x16xf32, #tpu.memory_space<vmem>>, vector<16x16xf32>,
      %c0_41 = arith.constant 0 : index
      %c125 = arith.constant 125 : index
      %65 = vector.load %arg11[%c0_41, %c125] : memref<16x149xf32, #tpu.memory_space<vmem>>, vector<16x16xf32>
      %66 = arith.mulf %65, %24 : vector<16x16xf32>
      %c32 = arith.constant 32 : index
      %c0_42 = arith.constant 0 : index
      %67 = vector.load %arg12[%c32, %c0_42] : memref<144x16xf32, #tpu.memory_space<vmem>>, vector<16x16xf32>
      tpu.vector_store %arg12[%c32, %c0_42], %66 {strides = array<i32>} : memref<144x16xf32, #tpu.memory_space<vmem>>, vector<16x16xf32>,
      %c0_43 = arith.constant 0 : index
      %c127 = arith.constant 127 : index
      %68 = vector.load %arg11[%c0_43, %c127] : memref<16x149xf32, #tpu.memory_space<vmem>>, vector<16x16xf32>
      %69 = arith.mulf %68, %20 : vector<16x16xf32>
      %c48 = arith.constant 48 : index
      %c0_44 = arith.constant 0 : index
      %70 = vector.load %arg12[%c48, %c0_44] : memref<144x16xf32, #tpu.memory_space<vmem>>, vector<16x16xf32>
      tpu.vector_store %arg12[%c48, %c0_44], %69 {strides = array<i32>} : memref<144x16xf32, #tpu.memory_space<vmem>>, vector<16x16xf32>,
      %c0_45 = arith.constant 0 : index
      %c128_46 = arith.constant 128 : index
      %71 = vector.load %arg11[%c0_45, %c128_46] : memref<16x149xf32, #tpu.memory_space<vmem>>, vector<16x16xf32>
      %c64 = arith.constant 64 : index
      %c0_47 = arith.constant 0 : index
      %72 = vector.load %arg12[%c64, %c0_47] : memref<144x16xf32, #tpu.memory_space<vmem>>, vector<16x16xf32>
      tpu.vector_store %arg12[%c64, %c0_47], %71 {strides = array<i32>} : memref<144x16xf32, #tpu.memory_space<vmem>>, vector<16x16xf32>,
      %c0_48 = arith.constant 0 : index
      %c129 = arith.constant 129 : index
      %73 = vector.load %arg11[%c0_48, %c129] : memref<16x149xf32, #tpu.memory_space<vmem>>, vector<16x16xf32>
      %74 = arith.mulf %73, %24 : vector<16x16xf32>
      %c80 = arith.constant 80 : index
      %c0_49 = arith.constant 0 : index
      %75 = vector.load %arg12[%c80, %c0_49] : memref<144x16xf32, #tpu.memory_space<vmem>>, vector<16x16xf32>
      tpu.vector_store %arg12[%c80, %c0_49], %74 {strides = array<i32>} : memref<144x16xf32, #tpu.memory_space<vmem>>, vector<16x16xf32>,
      %c0_50 = arith.constant 0 : index
      %c131 = arith.constant 131 : index
      %76 = vector.load %arg11[%c0_50, %c131] : memref<16x149xf32, #tpu.memory_space<vmem>>, vector<16x16xf32>
      %77 = arith.mulf %76, %20 : vector<16x16xf32>
      %c96 = arith.constant 96 : index
      %c0_51 = arith.constant 0 : index
      %78 = vector.load %arg12[%c96, %c0_51] : memref<144x16xf32, #tpu.memory_space<vmem>>, vector<16x16xf32>
      tpu.vector_store %arg12[%c96, %c0_51], %77 {strides = array<i32>} : memref<144x16xf32, #tpu.memory_space<vmem>>, vector<16x16xf32>,
      %c0_52 = arith.constant 0 : index
      %c132 = arith.constant 132 : index
      %79 = vector.load %arg11[%c0_52, %c132] : memref<16x149xf32, #tpu.memory_space<vmem>>, vector<16x16xf32>
      %c112 = arith.constant 112 : index
      %c0_53 = arith.constant 0 : index
      %80 = vector.load %arg12[%c112, %c0_53] : memref<144x16xf32, #tpu.memory_space<vmem>>, vector<16x16xf32>
      tpu.vector_store %arg12[%c112, %c0_53], %79 {strides = array<i32>} : memref<144x16xf32, #tpu.memory_space<vmem>>, vector<16x16xf32>,
      %c0_54 = arith.constant 0 : index
      %c133 = arith.constant 133 : index
      %81 = vector.load %arg11[%c0_54, %c133] : memref<16x149xf32, #tpu.memory_space<vmem>>, vector<16x16xf32>
      %82 = arith.mulf %81, %24 : vector<16x16xf32>
      %c128_55 = arith.constant 128 : index
      %c0_56 = arith.constant 0 : index
      %83 = vector.load %arg12[%c128_55, %c0_56] : memref<144x16xf32, #tpu.memory_space<vmem>>, vector<16x16xf32>
      tpu.vector_store %arg12[%c128_55, %c0_56], %82 {strides = array<i32>} : memref<144x16xf32, #tpu.memory_space<vmem>>, vector<16x16xf32>,
      %c0_57 = arith.constant 0 : index
      %c0_58 = arith.constant 0 : index
      %84 = vector.load %arg12[%c0_57, %c0_58] : memref<144x16xf32, #tpu.memory_space<vmem>>, vector<144x16xf32>
      %cst_59 = arith.constant dense<0.000000e+00> : vector<16x16xf32>
      %85 = tpu.matmul %55, %84, %cst_59 {dimension_numbers = #tpu.dot_dimension_numbers<[1], [0], [0], [1], [0, 0, 1, 1], [], []>} : vector<16x144xf32>, vector<144x16xf32>, vector<16x16xf32> -> vector<16x16xf32>
      %86 = vector.broadcast %58 : vector<16x1xf32> to vector<16x16xf32>
      %87 = arith.addf %85, %86 : vector<16x16xf32>
      %cst_60 = arith.constant 0.000000e+00 : f32
      %88 = vector.broadcast %cst_60 : f32 to vector<16x16xf32>
      %89 = arith.maximumf %87, %88 : vector<16x16xf32>
      %cst_61 = arith.constant dense<0.000000e+00> : vector<16xf32>
      %90 = vector.multi_reduction <add>, %89, %cst_61 [1] : vector<16x16xf32> to vector<16xf32>
      %91 = vector.shape_cast %90 : vector<16xf32> to vector<16x1xf32>
      %cst_62 = arith.constant 1.600000e+01 : f32
      %92 = vector.broadcast %cst_62 : f32 to vector<16x1xf32>
      %93 = arith.divf %91, %92 : vector<16x1xf32>
      %94 = vector.broadcast %93 : vector<16x1xf32> to vector<16x16xf32>
      %95 = arith.subf %89, %94 : vector<16x16xf32>
      %96 = arith.mulf %95, %95 : vector<16x16xf32>
      %cst_63 = arith.constant dense<0.000000e+00> : vector<16xf32>
      %97 = vector.multi_reduction <add>, %96, %cst_63 [1] : vector<16x16xf32> to vector<16xf32>
      %98 = vector.shape_cast %97 : vector<16xf32> to vector<16x1xf32>
      %cst_64 = arith.constant 1.600000e+01 : f32
      %99 = vector.broadcast %cst_64 : f32 to vector<16x1xf32>
      %100 = arith.divf %98, %99 : vector<16x1xf32>
      %101 = vector.broadcast %93 : vector<16x1xf32> to vector<16x16xf32>
      %102 = arith.subf %89, %101 : vector<16x16xf32>
      %cst_65 = arith.constant 9.99999974E-6 : f32
      %103 = vector.broadcast %cst_65 : f32 to vector<16x1xf32>
      %104 = arith.addf %100, %103 : vector<16x1xf32>
      %105 = math.rsqrt %104 : vector<16x1xf32>
      %106 = vector.broadcast %105 : vector<16x1xf32> to vector<16x16xf32>
      %107 = arith.mulf %102, %106 : vector<16x16xf32>
      %108 = arith.index_cast %arg13 : i32 to index
      %c0_66 = arith.constant 0 : index
      %c0_67 = arith.constant 0 : index
      %109 = vector.load %arg6[%108, %c0_66, %c0_67] : memref<5x16x144xf32, #tpu.memory_space<vmem>>, vector<1x16x144xf32>
      %110 = vector.shape_cast %109 : vector<1x16x144xf32> to vector<16x144xf32>
      %111 = arith.index_cast %arg13 : i32 to index
      %c0_68 = arith.constant 0 : index
      %c0_69 = arith.constant 0 : index
      %112 = vector.load %arg7[%111, %c0_68, %c0_69] : memref<5x16x1xf32, #tpu.memory_space<vmem>>, vector<1x16x1xf32>
      %113 = vector.shape_cast %112 : vector<1x16x1xf32> to vector<16x1xf32>
      %c0_70 = arith.constant 0 : index
      %c128_71 = arith.constant 128 : index
      %114 = vector.load %arg11[%c0_70, %c128_71] : memref<16x149xf32, #tpu.memory_space<vmem>>, vector<16x16xf32>
      tpu.vector_store %arg11[%c0_70, %c128_71], %107 {strides = array<i32>} : memref<16x149xf32, #tpu.memory_space<vmem>>, vector<16x16xf32>,
      %c0_72 = arith.constant 0 : index
      %c123_73 = arith.constant 123 : index
      %115 = vector.load %arg11[%c0_72, %c123_73] : memref<16x149xf32, #tpu.memory_space<vmem>>, vector<16x16xf32>
      %116 = arith.mulf %115, %20 : vector<16x16xf32>
      %c0_74 = arith.constant 0 : index
      %c0_75 = arith.constant 0 : index
      %117 = vector.load %arg12[%c0_74, %c0_75] : memref<144x16xf32, #tpu.memory_space<vmem>>, vector<16x16xf32>
      tpu.vector_store %arg12[%c0_74, %c0_75], %116 {strides = array<i32>} : memref<144x16xf32, #tpu.memory_space<vmem>>, vector<16x16xf32>,
      %c0_76 = arith.constant 0 : index
      %c124_77 = arith.constant 124 : index
      %118 = vector.load %arg11[%c0_76, %c124_77] : memref<16x149xf32, #tpu.memory_space<vmem>>, vector<16x16xf32>
      %c16_78 = arith.constant 16 : index
      %c0_79 = arith.constant 0 : index
      %119 = vector.load %arg12[%c16_78, %c0_79] : memref<144x16xf32, #tpu.memory_space<vmem>>, vector<16x16xf32>
      tpu.vector_store %arg12[%c16_78, %c0_79], %118 {strides = array<i32>} : memref<144x16xf32, #tpu.memory_space<vmem>>, vector<16x16xf32>,
      %c0_80 = arith.constant 0 : index
      %c125_81 = arith.constant 125 : index
      %120 = vector.load %arg11[%c0_80, %c125_81] : memref<16x149xf32, #tpu.memory_space<vmem>>, vector<16x16xf32>
      %121 = arith.mulf %120, %24 : vector<16x16xf32>
      %c32_82 = arith.constant 32 : index
      %c0_83 = arith.constant 0 : index
      %122 = vector.load %arg12[%c32_82, %c0_83] : memref<144x16xf32, #tpu.memory_space<vmem>>, vector<16x16xf32>
      tpu.vector_store %arg12[%c32_82, %c0_83], %121 {strides = array<i32>} : memref<144x16xf32, #tpu.memory_space<vmem>>, vector<16x16xf32>,
      %c0_84 = arith.constant 0 : index
      %c127_85 = arith.constant 127 : index
      %123 = vector.load %arg11[%c0_84, %c127_85] : memref<16x149xf32, #tpu.memory_space<vmem>>, vector<16x16xf32>
      %124 = arith.mulf %123, %20 : vector<16x16xf32>
      %c48_86 = arith.constant 48 : index
      %c0_87 = arith.constant 0 : index
      %125 = vector.load %arg12[%c48_86, %c0_87] : memref<144x16xf32, #tpu.memory_space<vmem>>, vector<16x16xf32>
      tpu.vector_store %arg12[%c48_86, %c0_87], %124 {strides = array<i32>} : memref<144x16xf32, #tpu.memory_space<vmem>>, vector<16x16xf32>,
      %c0_88 = arith.constant 0 : index
      %c128_89 = arith.constant 128 : index
      %126 = vector.load %arg11[%c0_88, %c128_89] : memref<16x149xf32, #tpu.memory_space<vmem>>, vector<16x16xf32>
      %c64_90 = arith.constant 64 : index
      %c0_91 = arith.constant 0 : index
      %127 = vector.load %arg12[%c64_90, %c0_91] : memref<144x16xf32, #tpu.memory_space<vmem>>, vector<16x16xf32>
      tpu.vector_store %arg12[%c64_90, %c0_91], %126 {strides = array<i32>} : memref<144x16xf32, #tpu.memory_space<vmem>>, vector<16x16xf32>,
      %c0_92 = arith.constant 0 : index
      %c129_93 = arith.constant 129 : index
      %128 = vector.load %arg11[%c0_92, %c129_93] : memref<16x149xf32, #tpu.memory_space<vmem>>, vector<16x16xf32>
      %129 = arith.mulf %128, %24 : vector<16x16xf32>
      %c80_94 = arith.constant 80 : index
      %c0_95 = arith.constant 0 : index
      %130 = vector.load %arg12[%c80_94, %c0_95] : memref<144x16xf32, #tpu.memory_space<vmem>>, vector<16x16xf32>
      tpu.vector_store %arg12[%c80_94, %c0_95], %129 {strides = array<i32>} : memref<144x16xf32, #tpu.memory_space<vmem>>, vector<16x16xf32>,
      %c0_96 = arith.constant 0 : index
      %c131_97 = arith.constant 131 : index
      %131 = vector.load %arg11[%c0_96, %c131_97] : memref<16x149xf32, #tpu.memory_space<vmem>>, vector<16x16xf32>
      %132 = arith.mulf %131, %20 : vector<16x16xf32>
      %c96_98 = arith.constant 96 : index
      %c0_99 = arith.constant 0 : index
      %133 = vector.load %arg12[%c96_98, %c0_99] : memref<144x16xf32, #tpu.memory_space<vmem>>, vector<16x16xf32>
      tpu.vector_store %arg12[%c96_98, %c0_99], %132 {strides = array<i32>} : memref<144x16xf32, #tpu.memory_space<vmem>>, vector<16x16xf32>,
      %c0_100 = arith.constant 0 : index
      %c132_101 = arith.constant 132 : index
      %134 = vector.load %arg11[%c0_100, %c132_101] : memref<16x149xf32, #tpu.memory_space<vmem>>, vector<16x16xf32>
      %c112_102 = arith.constant 112 : index
      %c0_103 = arith.constant 0 : index
      %135 = vector.load %arg12[%c112_102, %c0_103] : memref<144x16xf32, #tpu.memory_space<vmem>>, vector<16x16xf32>
      tpu.vector_store %arg12[%c112_102, %c0_103], %134 {strides = array<i32>} : memref<144x16xf32, #tpu.memory_space<vmem>>, vector<16x16xf32>,
      %c0_104 = arith.constant 0 : index
      %c133_105 = arith.constant 133 : index
      %136 = vector.load %arg11[%c0_104, %c133_105] : memref<16x149xf32, #tpu.memory_space<vmem>>, vector<16x16xf32>
      %137 = arith.mulf %136, %24 : vector<16x16xf32>
      %c128_106 = arith.constant 128 : index
      %c0_107 = arith.constant 0 : index
      %138 = vector.load %arg12[%c128_106, %c0_107] : memref<144x16xf32, #tpu.memory_space<vmem>>, vector<16x16xf32>
      tpu.vector_store %arg12[%c128_106, %c0_107], %137 {strides = array<i32>} : memref<144x16xf32, #tpu.memory_space<vmem>>, vector<16x16xf32>,
      %c0_108 = arith.constant 0 : index
      %c0_109 = arith.constant 0 : index
      %139 = vector.load %arg12[%c0_108, %c0_109] : memref<144x16xf32, #tpu.memory_space<vmem>>, vector<144x16xf32>
      %cst_110 = arith.constant dense<0.000000e+00> : vector<16x16xf32>
      %140 = tpu.matmul %110, %139, %cst_110 {dimension_numbers = #tpu.dot_dimension_numbers<[1], [0], [0], [1], [0, 0, 1, 1], [], []>} : vector<16x144xf32>, vector<144x16xf32>, vector<16x16xf32> -> vector<16x16xf32>
      %141 = vector.broadcast %113 : vector<16x1xf32> to vector<16x16xf32>
      %142 = arith.addf %140, %141 : vector<16x16xf32>
      %cst_111 = arith.constant dense<0.000000e+00> : vector<16xf32>
      %143 = vector.multi_reduction <add>, %142, %cst_111 [1] : vector<16x16xf32> to vector<16xf32>
      %144 = vector.shape_cast %143 : vector<16xf32> to vector<16x1xf32>
      %cst_112 = arith.constant 1.600000e+01 : f32
      %145 = vector.broadcast %cst_112 : f32 to vector<16x1xf32>
      %146 = arith.divf %144, %145 : vector<16x1xf32>
      %147 = vector.broadcast %146 : vector<16x1xf32> to vector<16x16xf32>
      %148 = arith.subf %142, %147 : vector<16x16xf32>
      %149 = arith.mulf %148, %148 : vector<16x16xf32>
      %cst_113 = arith.constant dense<0.000000e+00> : vector<16xf32>
      %150 = vector.multi_reduction <add>, %149, %cst_113 [1] : vector<16x16xf32> to vector<16xf32>
      %151 = vector.shape_cast %150 : vector<16xf32> to vector<16x1xf32>
      %cst_114 = arith.constant 1.600000e+01 : f32
      %152 = vector.broadcast %cst_114 : f32 to vector<16x1xf32>
      %153 = arith.divf %151, %152 : vector<16x1xf32>
      %154 = vector.broadcast %146 : vector<16x1xf32> to vector<16x16xf32>
      %155 = arith.subf %142, %154 : vector<16x16xf32>
      %cst_115 = arith.constant 9.99999974E-6 : f32
      %156 = vector.broadcast %cst_115 : f32 to vector<16x1xf32>
      %157 = arith.addf %153, %156 : vector<16x1xf32>
      %158 = math.rsqrt %157 : vector<16x1xf32>
      %159 = vector.broadcast %158 : vector<16x1xf32> to vector<16x16xf32>
      %160 = arith.mulf %155, %159 : vector<16x16xf32>
      %161 = arith.addf %arg14, %160 : vector<16x16xf32>
      scf.yield %161 : vector<16x16xf32>
    }
    %c5_i32_17 = arith.constant 5 : i32
    %c0_18 = arith.constant 0 : index
    %c0_19 = arith.constant 0 : index
    %38 = vector.load %arg8[%c0_18, %c0_19] : memref<48x16xf32, #tpu.memory_space<vmem>>, vector<48x16xf32>
    %cst_20 = arith.constant dense<0.000000e+00> : vector<48x16xf32>
    %39 = tpu.matmul %38, %37, %cst_20 {dimension_numbers = #tpu.dot_dimension_numbers<[1], [0], [0], [1], [0, 0, 1, 1], [], []>} : vector<48x16xf32>, vector<16x16xf32>, vector<48x16xf32> -> vector<48x16xf32>
    %c0_21 = arith.constant 0 : index
    %c0_22 = arith.constant 0 : index
    %40 = vector.load %arg9[%c0_21, %c0_22] : memref<48x1xf32, #tpu.memory_space<vmem>>, vector<48x1xf32>
    %41 = vector.broadcast %40 : vector<48x1xf32> to vector<48x16xf32>
    %42 = arith.addf %39, %41 : vector<48x16xf32>
    %c0_23 = arith.constant 0 : index
    %c0_24 = arith.constant 0 : index
    %c0_25 = arith.constant 0 : index
    %43 = vector.load %arg1[%c0_23, %c0_24, %c0_25] : memref<1x48x16xf32, #tpu.memory_space<vmem>>, vector<1x48x16xf32>
    %44 = vector.shape_cast %43 : vector<1x48x16xf32> to vector<48x16xf32>
    %45 = arith.addf %44, %42 : vector<48x16xf32>
    %cst_26 = arith.constant 0.000000e+00 : f32
    %cst_27 = arith.constant 1.000000e+00 : f32
    %46 = vector.broadcast %cst_26 : f32 to vector<48x16xf32>
    %47 = arith.maximumf %46, %45 : vector<48x16xf32>
    %48 = vector.broadcast %cst_27 : f32 to vector<48x16xf32>
    %49 = arith.minimumf %48, %47 : vector<48x16xf32>
    %c0_28 = arith.constant 0 : index
    %c0_29 = arith.constant 0 : index
    %c0_30 = arith.constant 0 : index
    %50 = vector.load %arg10[%c0_28, %c0_29, %c0_30] : memref<1x48x16xf32, #tpu.memory_space<vmem>>, vector<1x48x16xf32>
    %51 = vector.shape_cast %50 : vector<1x48x16xf32> to vector<48x16xf32>
    %52 = vector.shape_cast %49 : vector<48x16xf32> to vector<1x48x16xf32>
    tpu.vector_store %arg10[%c0_28, %c0_29, %c0_30], %52 {strides = array<i32>} : memref<1x48x16xf32, #tpu.memory_space<vmem>>, vector<1x48x16xf32>,
    return
  }
  func.func @transform_0(%arg0: i32) -> (i32, i32, i32) {
    %c0_i32 = arith.constant 0 : i32
    %c0_i32_0 = arith.constant 0 : i32
    %c0_i32_1 = arith.constant 0 : i32
    return %arg0, %c0_i32, %c0_i32_0 : i32, i32, i32
  }
  func.func @transform_1(%arg0: i32) -> (i32, i32) {
    %c0_i32 = arith.constant 0 : i32
    %c0_i32_0 = arith.constant 0 : i32
    %c0_i32_1 = arith.constant 0 : i32
    return %c0_i32, %c0_i32_0 : i32, i32
  }
  func.func @transform_2(%arg0: i32) -> (i32, i32) {
    %c0_i32 = arith.constant 0 : i32
    %c0_i32_0 = arith.constant 0 : i32
    %c0_i32_1 = arith.constant 0 : i32
    return %c0_i32, %c0_i32_0 : i32, i32
  }
  func.func @transform_3(%arg0: i32) -> (i32, i32, i32) {
    %c0_i32 = arith.constant 0 : i32
    %c0_i32_0 = arith.constant 0 : i32
    %c0_i32_1 = arith.constant 0 : i32
    %c0_i32_2 = arith.constant 0 : i32
    return %c0_i32, %c0_i32_0, %c0_i32_1 : i32, i32, i32
  }
  func.func @transform_4(%arg0: i32) -> (i32, i32, i32) {
    %c0_i32 = arith.constant 0 : i32
    %c0_i32_0 = arith.constant 0 : i32
    %c0_i32_1 = arith.constant 0 : i32
    %c0_i32_2 = arith.constant 0 : i32
    return %c0_i32, %c0_i32_0, %c0_i32_1 : i32, i32, i32
  }
  func.func @transform_5(%arg0: i32) -> (i32, i32, i32) {
    %c0_i32 = arith.constant 0 : i32
    %c0_i32_0 = arith.constant 0 : i32
    %c0_i32_1 = arith.constant 0 : i32
    %c0_i32_2 = arith.constant 0 : i32
    return %c0_i32, %c0_i32_0, %c0_i32_1 : i32, i32, i32
  }
  func.func @transform_6(%arg0: i32) -> (i32, i32, i32) {
    %c0_i32 = arith.constant 0 : i32
    %c0_i32_0 = arith.constant 0 : i32
    %c0_i32_1 = arith.constant 0 : i32
    %c0_i32_2 = arith.constant 0 : i32
    return %c0_i32, %c0_i32_0, %c0_i32_1 : i32, i32, i32
  }
  func.func @transform_7(%arg0: i32) -> (i32, i32) {
    %c0_i32 = arith.constant 0 : i32
    %c0_i32_0 = arith.constant 0 : i32
    %c0_i32_1 = arith.constant 0 : i32
    return %c0_i32, %c0_i32_0 : i32, i32
  }
  func.func @transform_8(%arg0: i32) -> (i32, i32) {
    %c0_i32 = arith.constant 0 : i32
    %c0_i32_0 = arith.constant 0 : i32
    %c0_i32_1 = arith.constant 0 : i32
    return %c0_i32, %c0_i32_0 : i32, i32
  }
  func.func @transform_9(%arg0: i32) -> (i32, i32, i32) {
    %c0_i32 = arith.constant 0 : i32
    %c0_i32_0 = arith.constant 0 : i32
    %c0_i32_1 = arith.constant 0 : i32
    return %arg0, %c0_i32, %c0_i32_0 : i32, i32, i32
  }
}

</mosaic_0001>

<bundles_post_ra>
// kernel: _lambda_.1
= control target key start
LH: loop header
LB: loop body
LE: loop exit
PB: predicated region body
PF: predicated region fallthrough
CT: control target
= control target key end

     0   :  { %s1665_s30 = smov 0   ;;  %s2081_s0 = inlined_call_operand.vmem [shape: f32[2,48,16], index: 0, kind: input, shape index: {}]   ;;  %s2082_s1 = inlined_call_operand.vmem [shape: f32[16,48], index: 1, kind: input, shape index: {}]   ;;  %s2083_s2 = inlined_call_operand.vmem [shape: f32[16,1], index: 2, kind: input, shape index: {}]   ;;  %s2084_s3 = inlined_call_operand.vmem [shape: f32[5,16,144], index: 3, kind: input, shape index: {}]   ;;  %s2085_s4 = inlined_call_operand.vmem [shape: f32[5,16,1], index: 4, kind: input, shape index: {}]   ;;  %s2086_s5 = inlined_call_operand.vmem [shape: f32[5,16,144], index: 5, kind: input, shape index: {}]   ;;  %s2087_s6 = inlined_call_operand.vmem [shape: f32[5,16,1], index: 6, kind: input, shape index: {}]   ;;  %s2088_s7 = inlined_call_operand.vmem [shape: f32[48,16], index: 7, kind: input, shape index: {}]   ;;  %s2089_s8 = inlined_call_operand.vmem [shape: f32[48,1], index: 8, kind: input, shape index: {}]   ;;  %s2090_s9 = inlined_call_operand.vmem [shape: f32[2,48,16], index: 9, kind: output, shape index: {}]  }
   0x1 LB: > { %s1368_s10 = sadd.s32 4294967295, %s1589_s30   ;;  %p1372_p0 = scmp.ge.s32.totalorder %s1589_s30, 1  ;;  %s1589_s30 = sphi %s1665_s30, %s19_s30  }
   0x2   : > { %p287_p1 = scmp.lt.s32.totalorder %s1589_s30, 3 }
   0x4   : > { %p288_p2 = pnand %p1372_p0, %p287_p1 }
   0x5   : > { %p323_p3 = scmp.lt.s32.totalorder (!%p288_p2), %s1368_s10, 1  ;;  %v333_v0 = vlaneseq (!%p288_p2)  ;;  %vm355_vm0 = vcmask (!%p288_p2), 171136   ;;  %v358_v1 = vld [vmem:[%s2082_s1] sm:$0xff] (!%p288_p2)  ;;  %vm378_vm1 = vcmask (!%p288_p2), 392192   ;;  %v1603_v2 = vmov (!%p288_p2), 0.0   ;;  %v367_v7 = vld [vmem:[%s2083_s2 + $0x8] sm:$0xff] (!%p288_p2) }
   0x6   : > { %291 = sbr.rel (%p288_p2) target bundleno = 2000 (0x7d0), region = 56  ;;  %353 = vst [vmem:[#allocation2] sm:$0xff] (!%p288_p2), %v1603_v2  ;;  %354 = vst [vmem:[#allocation2 + $0x10] sm:$0xff] (!%p288_p2), %v1603_v2  ;;  %1425 = vmatprep.mubr.msk.f32.mxu0 (!%p288_p2), %vm378_vm1, %v358_v1  ;;  %v366_v3 = vld [vmem:[%s2083_s2] sm:$0xff] (!%p288_p2)  ;;  %v1604_v5 = vmov (!%p288_p2), 0   ;;  %v359_v19 = vld [vmem:[%s2082_s1 + $0x8] sm:$0xff] (!%p288_p2) }
   0x7   : > { %356 = vst.msk [vmem:[#allocation2 + $0x8] sm:$0xff] (!%p288_p2), %vm355_vm0, %v1603_v2  ;;  %357 = vst.msk [vmem:[#allocation2 + $0x18] sm:$0xff] (!%p288_p2), %vm355_vm0, %v1603_v2  ;;  %v334_v4 = vand.u32 (!%p288_p2), 127, %v333_v0  ;;  %1558 = vset.pattern.permute.xlu0 (!%p288_p2), %v1604_v5  ;;  %s1712_s26 = smov (!%p288_p2), 0  }
   0x8   : > { %370 = vperm.xlu0 (!%p288_p2), %1558, %v366_v3  }
   0x9   : > { %v339_v6 = vand.u32 (!%p288_p2), 3, %v334_v4 }
   0xb   : > { %vm347_vm2 = vcmp.ge.s32.totalorder (!%p288_p2), %v339_v6, 1  ;;  %vm350_vm3 = vcmp.le.s32.totalorder (!%p288_p2), %v339_v6, 2 }
   0xc   : > { %v1694_v8 = vsel (!%p288_p2), %vm347_vm2, 1.0, %v1603_v2  ;;  %v1696_v9 = vsel (!%p288_p2), %vm350_vm3, 1.0, %v1603_v2  ;;  %375 = vperm.xlu0 (!%p288_p2), %1558, %v367_v7  }
   0xd   : > { %s2094_s10 = smov (!%p323_p3, %s1368_s10), 1 }
   0xe   : > { %s1513_s15 = smul.u32 48, %s2094_s10 }
  0x10   : > { %s1687_s20 = scalar_lea.vmem %s2081_s0, %s1513_s15  ;;  %s1692_s23 = scalar_lea.vmem %s2090_s9, %s1513_s15 }
  0x11   : > { %v360_v10 = vld [vmem:[%s1687_s20] sm:$0xff]  ;;  %v361_v11 = vld [vmem:[%s1687_s20 + $0x8] sm:$0xff]  ;;  %v362_v12 = vld [vmem:[%s1687_s20 + $0x10] sm:$0xff] }
  0x12   : > { %v1441_v13 = vpack.c.bf16 %v361_v11, %v360_v10  ;;  %v363_v14 = vld [vmem:[%s1687_s20 + $0x18] sm:$0xff]  ;;  %v364_v16 = vld [vmem:[%s1687_s20 + $0x20] sm:$0xff]  ;;  %v365_v17 = vld [vmem:[%s1687_s20 + $0x28] sm:$0xff] }
  0x13   : > { %v1445_v15 = vpack.c.bf16 %v363_v14, %v362_v12  ;;  %v1449_v18 = vpack.c.bf16 %v365_v17, %v364_v16 }
  0x14   : > { %1442 = vmatprep.subr.bf16.mxu0 %v1441_v13 }
  0x15   : > { %1444 = vmatpush3.bf16.msra.mxu0 %v1441_v13 }
  0x16   : > { %1446 = vmatprep.subr.bf16.mxu0 %v1445_v15 }
  0x19   : > { %1448 = vmatpush3.bf16.msra.mxu0 %v1445_v15 }
  0x1a   : > { %1450 = vmatprep.subr.bf16.mxu0 %v1449_v18 }
  0x1d   : > { %1452 = vmatpush3.bf16.msra.mxu0 %v1449_v18 }
  0x20   : > { %1426 = vmatmul.mubr.msk.f32.vlgmr.msra.gmra.mrb[0].mxu0 %vm378_vm1, %v359_v19 }
  0x87   : > { %v371_v20 = vpop.permute.xlu0 %370 }
  0x8b   : > { %v376_v21 = vpop.permute.xlu0 %375 }
  0xf3   : > { %v1427_v22 = vpop.f32.mrb[0].mxu0 }
  0xf4   : > { %v457_v23 = vadd.f32 %v1427_v22, %v376_v21   ;;  %v451_v24 = vpop.f32.mrb[1].mxu0 }
  0xf5   : > { %v452_v25 = vadd.f32 %v451_v24, %v371_v20  }
  0xf6 LB: >> { %vm479_vm4 = vcmask 130048   ;;  %s1605_s27 = smov 123   ;;  %s1606_s28 = smov 127   ;;  %v1743_v28 = vld [vmem:[#allocation2] sm:$0xff]  ;;  %v1753_v29 = vld [vmem:[#allocation2 + $0x10] sm:$0xff]  ;;  %v1612_v35 = vmov 0.0|0.0   ;;  %s1601_s26 = sphi %s1712_s26, %s465_s26   ;;  %v1597_v25 = vphi %v452_v25, %v2092_v25   ;;  %v1593_v23 = vphi %v457_v23, %v2091_v23  }
  0xf7   : >> { %487 = vrot.lane.b32.xlu0 %v1694_v8, %s1605_s27  ;;  %571 = vrot.lane.b32.xlu1 %v1694_v8, %s1606_s28  ;;  %480 = vst.msk [vmem:[#allocation2 + $0x8] sm:$0xff] %vm479_vm4, %v1597_v25  ;;  %481 = vst.msk [vmem:[#allocation2 + $0x18] sm:$0xff] %vm479_vm4, %v1593_v23  ;;  %s1607_s29 = smov 125   ;;  %s1608_s10 = smov 1   ;;  %vm529_vm5 = vcmask 31744   ;;  %v1614_v62 = vmov 0  }
  0xf8   : >> { %s1609_s11 = smov 3   ;;  %s1610_s12 = smov 5   ;;  %1453 = vmatprep.subr.bf16.mxu0 %v1612_v35  ;;  %1480 = vmatprep.subr.bf16.mxu1 %v1612_v35  ;;  %vm506_vm6 = vcmask 39936   ;;  %vm560_vm7 = vcmask 23552   ;;  %vm590_vm8 = vcmask 7168  }
  0xf9   : >> { %s1611_s13 = smov 4   ;;  %s1613_s14 = smov 124   ;;  %1559 = vset.pattern.permute.xlu0 %v1614_v62  ;;  %1560 = vset.pattern.permute.xlu1 %v1614_v62 }
  0xfa   : >> { %s1395_s15 = sshll.u32 %s1601_s26, 5  ;;  %s1381_s19 = sshll.u32 %s1601_s26, 4 }
  0xfb   : >> { %541 = vrot.lane.b32.xlu0 %v1696_v9, %s1607_s29  ;;  %603 = vrot.lane.b32.xlu1 %v1696_v9, %s1608_s10  ;;  %s1859_s18 = scalar_lea.vmem %s2084_s3, %s1395_s15  ;;  %s476_s24 = scalar_lea.vmem %s2085_s4, %s1381_s19 }
  0xfc   : >> { %v472_v61 = vld [vmem:[%s1859_s18 + $0x8] sm:$0xff]  ;;  %v477_v63 = vld [vmem:[%s476_s24] sm:$0xff]  ;;  %s465_s26 = sadd.s32 1, %s1601_s26  }
  0xfd   : >> { %1382 = vmatprep.mubr.msk.f32.mxu0 %vm479_vm4, %v472_v61  ;;  %v478_v0 = vld [vmem:[%s476_s24 + $0x8] sm:$0xff]  ;;  %p462_p4 = scmp.ge.s32.totalorder %s465_s26, 5  }
  0xfe   : >> { %v1737_v26 = vld [vmem:[#allocation2 + $0x8] sm:$0xff]  ;;  %v1739_v27 = vld [vmem:[#allocation2 + $0x18] sm:$0xff] }
  0xff   : >> { %620 = vrot.lane.b32.xlu0 %v1694_v8, %s1609_s11  ;;  %649 = vrot.lane.b32.xlu1 %v1696_v9, %s1610_s12  ;;  %599 = vst.msk [vmem:[#allocation3 + $0x40] sm:$0xff] %vm479_vm4, %v1737_v26  ;;  %600 = vst.msk [vmem:[#allocation3 + $0x48] sm:$0xff] %vm479_vm4, %v1739_v27  ;;  %v1116_v8 = vld [vmem:[%s2089_s8 + $0x10] sm:$0xff] (%p462_p4)  ;;  %v1114_v9 = vld [vmem:[%s2089_s8] sm:$0xff] (%p462_p4) }
 0x103   : >> { %521 = vrot.lane.b32.xlu0 %v1743_v28, %s1611_s13  ;;  %523 = vrot.lane.b32.xlu1 %v1737_v26, %s1611_s13 }
 0x107   : >> { %525 = vrot.lane.b32.xlu0 %v1753_v29, %s1611_s13  ;;  %527 = vrot.lane.b32.xlu1 %v1739_v27, %s1611_s13 }
 0x169   : >> { %v1759_v30 = vpop.permute.xlu0 %487  ;;  %v1767_v33 = vpop.permute.xlu1 %571 }
 0x16a   : >> { %v1763_v31 = vmul.f32 %v1743_v28, %v1759_v30  ;;  %v491_v32 = vmul.f32 %v1737_v26, %v1759_v30  ;;  %v1778_v36 = vmul.f32 %v1753_v29, %v1759_v30  ;;  %v493_v37 = vmul.f32 %v1739_v27, %v1759_v30 }
 0x16b   : >> { %v1812_v48 = vmul.f32 %v1767_v33, %v1743_v28  ;;  %v575_v49 = vmul.f32 %v1767_v33, %v1737_v26  ;;  %v1824_v53 = vmul.f32 %v1767_v33, %v1753_v29  ;;  %v577_v54 = vmul.f32 %v1767_v33, %v1739_v27 }
 0x16c   : >> { %498 = vrot.lane.b32.xlu0 %v1763_v31, %s1610_s12  ;;  %500 = vrot.lane.b32.xlu1 %v491_v32, %s1610_s12 }
 0x16d   : >> { %v1772_v34 = vpop.permute.xlu0 %541  ;;  %v1782_v38 = vpop.permute.xlu1 %603 }
 0x16e   : >> { %v1789_v39 = vmul.f32 %v1772_v34, %v1743_v28  ;;  %v545_v40 = vmul.f32 %v1772_v34, %v1737_v26  ;;  %v1802_v44 = vmul.f32 %v1772_v34, %v1753_v29  ;;  %v547_v45 = vmul.f32 %v1772_v34, %v1739_v27 }
 0x16f   : >> { %v606_v55 = vmul.f32 %v1782_v38, %v1737_v26  ;;  %v607_v56 = vmul.f32 %v1782_v38, %v1739_v27 }
 0x170   : >> { %502 = vrot.lane.b32.xlu0 %v1778_v36, %s1610_s12  ;;  %504 = vrot.lane.b32.xlu1 %v493_v37, %s1610_s12 }
 0x171   : >> { %v1793_v41 = vpop.permute.xlu0 %620  ;;  %v1795_v42 = vpop.permute.xlu1 %649 }
 0x172   : >> { %v623_v57 = vmul.f32 %v1793_v41, %v1737_v26  ;;  %v624_v58 = vmul.f32 %v1793_v41, %v1739_v27  ;;  %v652_v59 = vmul.f32 %v1795_v42, %v1737_v26  ;;  %v653_v60 = vmul.f32 %v1795_v42, %v1739_v27 }
 0x174   : >> { %552 = vrot.lane.b32.xlu0 %v1789_v39, %s1609_s11  ;;  %554 = vrot.lane.b32.xlu1 %v545_v40, %s1609_s11 }
 0x175   : >> { %v522_v43 = vpop.permute.xlu0 %521  ;;  %v524_v46 = vpop.permute.xlu1 %523 }
 0x176   : >> { %v530_v47 = vsel %vm529_vm5, %v522_v43, %v524_v46 }
 0x177   : >> { %534 = vst.msk [vmem:[#allocation3 + $0x10] sm:$0xff] %vm479_vm4, %v530_v47 }
 0x178   : >> { %556 = vrot.lane.b32.xlu0 %v1802_v44, %s1609_s11  ;;  %558 = vrot.lane.b32.xlu1 %v547_v45, %s1609_s11 }
 0x179   : >> { %v526_v50 = vpop.permute.xlu0 %525  ;;  %v528_v51 = vpop.permute.xlu1 %527 }
 0x17a   : >> { %v531_v52 = vsel %vm529_vm5, %v526_v50, %v528_v51  ;;  %v672_v51 = vld [vmem:[#allocation3 + $0x40] sm:$0xff] }
 0x17b   : >> { %535 = vst.msk [vmem:[#allocation3 + $0x18] sm:$0xff] %vm479_vm4, %v531_v52 }
 0x17c   : >> { %582 = vrot.lane.b32.xlu0 %v1812_v48, %s1608_s10  ;;  %584 = vrot.lane.b32.xlu1 %v575_v49, %s1608_s10 }
 0x17e   : >> { %v666_v19 = vld [vmem:[#allocation3 + $0x10] sm:$0xff] }
 0x180   : >> { %586 = vrot.lane.b32.xlu0 %v1824_v53, %s1608_s10  ;;  %588 = vrot.lane.b32.xlu1 %v577_v54, %s1608_s10 }
 0x182   : >> { %v667_v20 = vld [vmem:[#allocation3 + $0x18] sm:$0xff] }
 0x184   : >> { %610 = vrot.lane.b32.xlu0 %v606_v55, %s1606_s28  ;;  %612 = vrot.lane.b32.xlu1 %v607_v56, %s1606_s28  ;;  %v673_v55 = vld [vmem:[#allocation3 + $0x48] sm:$0xff] }
 0x188   : >> { %627 = vrot.lane.b32.xlu0 %v623_v57, %s1607_s29  ;;  %629 = vrot.lane.b32.xlu1 %v624_v58, %s1607_s29  ;;  %v1466_v57 = vpack.c.bf16 %v673_v55, %v672_v51 }
 0x18c   : >> { %639 = vrot.lane.b32.xlu0 %v1737_v26, %s1613_s14  ;;  %641 = vrot.lane.b32.xlu1 %v1739_v27, %s1613_s14  ;;  %v1457_v26 = vpack.c.bf16 %v667_v20, %v666_v19 }
 0x190   : >> { %656 = vrot.lane.b32.xlu0 %v652_v59, %s1605_s27  ;;  %658 = vrot.lane.b32.xlu1 %v653_v60, %s1605_s27 }
 0x194   : >> { %684 = vperm.xlu0 %1559, %v477_v63   ;;  %689 = vperm.xlu1 %1560, %v478_v0  }
 0x1de   : >> { %v499_v1 = vpop.permute.xlu0 %498  ;;  %v501_v2 = vpop.permute.xlu1 %500 }
 0x1df   : >> { %v507_v3 = vsel %vm506_vm6, %v499_v1, %v501_v2 }
 0x1e0   : >> { %511 = vst.msk [vmem:[#allocation3] sm:$0xff] %vm479_vm4, %v507_v3 }
 0x1e2   : >> { %v503_v4 = vpop.permute.xlu0 %502  ;;  %v505_v6 = vpop.permute.xlu1 %504 }
 0x1e3   : >> { %v508_v7 = vsel %vm506_vm6, %v503_v4, %v505_v6 }
 0x1e4   : >> { %512 = vst.msk [vmem:[#allocation3 + $0x8] sm:$0xff] %vm479_vm4, %v508_v7 }
 0x1e6   : >> { %v553_v10 = vpop.permute.xlu0 %552  ;;  %v555_v11 = vpop.permute.xlu1 %554 }
 0x1e7   : >> { %v561_v12 = vsel %vm560_vm7, %v553_v10, %v555_v11  ;;  %v664_v16 = vld [vmem:[#allocation3] sm:$0xff] }
 0x1e8   : >> { %565 = vst.msk [vmem:[#allocation3 + $0x20] sm:$0xff] %vm479_vm4, %v561_v12 }
 0x1ea   : >> { %v557_v13 = vpop.permute.xlu0 %556  ;;  %v559_v14 = vpop.permute.xlu1 %558 }
 0x1eb   : >> { %v562_v15 = vsel %vm560_vm7, %v557_v13, %v559_v14  ;;  %v665_v17 = vld [vmem:[#allocation3 + $0x8] sm:$0xff]  ;;  %v471_v13 = vld [vmem:[%s1859_s18] sm:$0xff]  ;;  %v474_v14 = vld [vmem:[%s1859_s18 + $0x18] sm:$0xff] }
 0x1ec   : >> { %566 = vst.msk [vmem:[#allocation3 + $0x28] sm:$0xff] %vm479_vm4, %v562_v15  ;;  %v1454_v18 = vpack.c.bf16 %v665_v17, %v664_v16  ;;  %v473_v15 = vld [vmem:[%s1859_s18 + $0x10] sm:$0xff] }
 0x1ee   : >> { %v583_v21 = vpop.permute.xlu0 %582  ;;  %1455 = vmatpush1.bf16.msra.mxu0 %v1454_v18  ;;  %v585_v22 = vpop.permute.xlu1 %584 }
 0x1ef   : >> { %v591_v24 = vsel %vm590_vm8, %v583_v21, %v585_v22  ;;  %1456 = vmatprep.subr.bf16.mxu0 %v1612_v35  ;;  %v668_v40 = vld [vmem:[#allocation3 + $0x20] sm:$0xff] }
 0x1f0   : >> { %595 = vst.msk [vmem:[#allocation3 + $0x30] sm:$0xff] %vm479_vm4, %v591_v24 }
 0x1f2   : >> { %v587_v27 = vpop.permute.xlu0 %586  ;;  %1458 = vmatpush1.bf16.msra.mxu0 %v1457_v26  ;;  %v589_v32 = vpop.permute.xlu1 %588 }
 0x1f3   : >> { %v592_v37 = vsel %vm590_vm8, %v587_v27, %v589_v32  ;;  %1459 = vmatprep.subr.bf16.mxu0 %v1612_v35  ;;  %v669_v43 = vld [vmem:[#allocation3 + $0x28] sm:$0xff] }
 0x1f4   : >> { %596 = vst.msk [vmem:[#allocation3 + $0x38] sm:$0xff] %vm479_vm4, %v592_v37  ;;  %v1460_v45 = vpack.c.bf16 %v669_v43, %v668_v40 }
 0x1f6   : >> { %1461 = vmatpush1.bf16.msra.mxu0 %v1460_v45  ;;  %v611_v46 = vpop.permute.xlu0 %610  ;;  %v613_v47 = vpop.permute.xlu1 %612 }
 0x1f7   : >> { %616 = vst.msk [vmem:[#allocation3 + $0x50] sm:$0xff] %vm479_vm4, %v611_v46  ;;  %617 = vst.msk [vmem:[#allocation3 + $0x58] sm:$0xff] %vm479_vm4, %v613_v47  ;;  %1462 = vmatprep.subr.bf16.mxu0 %v1612_v35  ;;  %v670_v52 = vld [vmem:[#allocation3 + $0x30] sm:$0xff] }
 0x1fa   : >> { %v628_v49 = vpop.permute.xlu0 %627  ;;  %v630_v50 = vpop.permute.xlu1 %629 }
 0x1fb   : >> { %v671_v54 = vld [vmem:[#allocation3 + $0x38] sm:$0xff]  ;;  %633 = vst.msk [vmem:[#allocation3 + $0x60] sm:$0xff] %vm479_vm4, %v628_v49  ;;  %634 = vst.msk [vmem:[#allocation3 + $0x68] sm:$0xff] %vm479_vm4, %v630_v50 }
 0x1fc   : >> { %v1463_v56 = vpack.c.bf16 %v671_v54, %v670_v52 }
 0x1fe   : >> { %1464 = vmatpush1.bf16.msra.mxu0 %v1463_v56  ;;  %v640_v58 = vpop.permute.xlu0 %639  ;;  %v642_v59 = vpop.permute.xlu1 %641  ;;  %v674_v60 = vld [vmem:[#allocation3 + $0x50] sm:$0xff]  ;;  %v675_v61 = vld [vmem:[#allocation3 + $0x58] sm:$0xff] }
 0x1ff   : >> { %1465 = vmatprep.subr.bf16.mxu0 %v1612_v35  ;;  %645 = vst.msk [vmem:[#allocation3 + $0x70] sm:$0xff] %vm479_vm4, %v640_v58  ;;  %646 = vst.msk [vmem:[#allocation3 + $0x78] sm:$0xff] %vm479_vm4, %v642_v59  ;;  %v1469_v62 = vpack.c.bf16 %v675_v61, %v674_v60 }
 0x202   : >> { %1467 = vmatpush1.bf16.msra.mxu0 %v1466_v57  ;;  %v657_v63 = vpop.permute.xlu0 %656  ;;  %v659_v0 = vpop.permute.xlu1 %658  ;;  %v676_v1 = vld [vmem:[#allocation3 + $0x60] sm:$0xff]  ;;  %v677_v2 = vld [vmem:[#allocation3 + $0x68] sm:$0xff] }
 0x203   : >> { %1468 = vmatprep.subr.bf16.mxu0 %v1612_v35  ;;  %662 = vst.msk [vmem:[#allocation3 + $0x80] sm:$0xff] %vm479_vm4, %v657_v63  ;;  %663 = vst.msk [vmem:[#allocation3 + $0x88] sm:$0xff] %vm479_vm4, %v659_v0  ;;  %v1472_v3 = vpack.c.bf16 %v677_v2, %v676_v1 }
 0x206   : >> { %1470 = vmatpush1.bf16.msra.mxu0 %v1469_v62  ;;  %v678_v4 = vld [vmem:[#allocation3 + $0x70] sm:$0xff]  ;;  %v679_v6 = vld [vmem:[#allocation3 + $0x78] sm:$0xff] }
 0x207   : >> { %1471 = vmatprep.subr.bf16.mxu0 %v1612_v35  ;;  %v1475_v7 = vpack.c.bf16 %v679_v6, %v678_v4 }
 0x20a   : >> { %1473 = vmatpush1.bf16.msra.mxu0 %v1472_v3  ;;  %v680_v10 = vld [vmem:[#allocation3 + $0x80] sm:$0xff]  ;;  %v681_v11 = vld [vmem:[#allocation3 + $0x88] sm:$0xff] }
 0x20b   : >> { %1474 = vmatprep.subr.bf16.mxu0 %v1612_v35  ;;  %v1478_v12 = vpack.c.bf16 %v681_v11, %v680_v10 }
 0x20e   : >> { %1476 = vmatpush1.bf16.msra.mxu0 %v1475_v7 }
 0x20f   : >> { %1477 = vmatprep.subr.bf16.mxu0 %v1612_v35 }
 0x212   : >> { %1479 = vmatpush1.bf16.msra.mxu0 %v1478_v12 }
 0x213   : >> { %v685_v16 = vpop.permute.xlu0 %684  ;;  %v690_v20 = vpop.permute.xlu1 %689 }
 0x215   : >> { %763 = vmatmul.mubr.f32.vlgmr.msra.gmra.mrb[0].mxu0 %v471_v13 }
 0x216   : >> { %1383 = vmatprep.mubr.msk.f32.mxu0 %vm479_vm4, %v474_v14 }
 0x219   : >> { %768 = vmatmul.mubr.f32.gmra.mrb[2].mxu0 %v473_v15 }
 0x2e8   : >> { %v764_v17 = vpop.f32.mrb[0].mxu0 }
 0x2e9   : >> { %v765_v18 = vadd.f32 %v764_v17, %v685_v16  ;;  %v766_v19 = vpop.f32.mrb[1].mxu0 }
 0x2eb   : >> { %v773_v21 = vmax.f32 %v765_v18, 0.0 }
 0x2ec   : >> { %v769_v22 = vpop.f32.mrb[2].mxu0 }
 0x2ed   : >> { %v770_v24 = vadd.f32 %v769_v22, %v690_v20  ;;  %v775_v26 = vsel %vm479_vm4, %v773_v21, 0.0  ;;  %v771_v27 = vpop.f32.mrb[3].mxu0 }
 0x2ee   : >> { %776 = vadd.xlane.f32.xlu1 %v775_v26 }
 0x2ef   : >> { %v774_v32 = vmax.f32 %v770_v24, 0.0 }
 0x2f1   : >> { %v778_v37 = vsel %vm479_vm4, %v774_v32, 0.0 }
 0x2f2   : >> { %779 = vadd.xlane.f32.xlu0 %v778_v37 }
 0x37b   : >> { %v777_v40 = vpop.xlane.xlu1 %776 }
 0x37c   : >> { %v782_v43 = vmul.f32 0.0625, %v777_v40 }
 0x37e   : >> { %v784_v45 = vsub.f32 %v773_v21, %v782_v43 }
 0x37f   : >> { %v780_v46 = vpop.xlane.xlu0 %779 }
 0x380   : >> { %v783_v47 = vmul.f32 0.0625, %v780_v46  ;;  %v786_v49 = vmul.f32 %v784_v45, %v784_v45 }
 0x382   : >> { %v785_v50 = vsub.f32 %v774_v32, %v783_v47  ;;  %v788_v51 = vsel %vm479_vm4, %v786_v49, 0.0 }
 0x383   : >> { %789 = vadd.xlane.f32.xlu0 %v788_v51 }
 0x384   : >> { %v787_v52 = vmul.f32 %v785_v50, %v785_v50 }
 0x386   : >> { %v791_v54 = vsel %vm479_vm4, %v787_v52, 0.0 }
 0x387   : >> { %792 = vadd.xlane.f32.xlu1 %v791_v54 }
 0x398   : >> { %829 = vrot.lane.b32.xlu1 %v1778_v36, %s1610_s12 }
 0x399   : >> { %825 = vrot.lane.b32.xlu0 %v1763_v31, %s1610_s12 }
 0x39c   : >> { %847 = vrot.lane.b32.xlu1 %v1743_v28, %s1611_s13 }
 0x3a0   : >> { %851 = vrot.lane.b32.xlu1 %v1753_v29, %s1611_s13 }
 0x3a4   : >> { %873 = vrot.lane.b32.xlu1 %v1789_v39, %s1609_s11 }
 0x410   : >> { %v790_v55 = vpop.xlane.xlu0 %789 }
 0x411   : >> { %v794_v56 = vmul.f32 0.0625, %v790_v55 }
 0x413   : >> { %v796_v57 = vadd.f32 1e-05, %v794_v56 }
 0x414   : >> { %v793_v58 = vpop.xlane.xlu1 %792  ;;  %v826_v11 = vpop.permute.xlu0 %825 }
 0x415   : >> { %1561 = vrsqrt.f32 %v796_v57  ;;  %v795_v59 = vmul.f32 0.0625, %v793_v58 }
 0x417   : >> { %v797_v60 = vadd.f32 1e-05, %v795_v59 }
 0x418   : >> { %v830_v6 = vpop.permute.xlu1 %829 }
 0x419   : >> { %1563 = vrsqrt.f32 %v797_v60 }
 0x41c   : >> { %v848_v7 = vpop.permute.xlu1 %847 }
 0x41f   : >> { %v1562_v36 = vpop.eup %1561 }
 0x420   : >> { %v800_v61 = vmul.f32 %v1562_v36, %v784_v45  ;;  %v852_v10 = vpop.permute.xlu1 %851 }
 0x422   : >> { %811 = vst.msk [vmem:[#allocation2 + $0x8] sm:$0xff] %vm479_vm4, %v800_v61 }
 0x423   : >> { %v1564_v31 = vpop.eup %1563 }
 0x424   : >> { %v801_v28 = vmul.f32 %v1564_v31, %v785_v50  ;;  %v874_v12 = vpop.permute.xlu1 %873 }
 0x426   : >> { %812 = vst.msk [vmem:[#allocation2 + $0x18] sm:$0xff] %vm479_vm4, %v801_v28 }
 0x429   : >> { %v840_v29 = vld [vmem:[#allocation2 + $0x8] sm:$0xff] }
 0x42a   : >> { %849 = vrot.lane.b32.xlu0 %v840_v29, %s1611_s13  ;;  %v818_v39 = vmul.f32 %v840_v29, %v1759_v30  ;;  %915 = vst.msk [vmem:[#allocation3 + $0x40] sm:$0xff] %vm479_vm4, %v840_v29  ;;  %v866_v62 = vmul.f32 %v840_v29, %v1772_v34  ;;  %v892_v1 = vmul.f32 %v840_v29, %v1767_v33 }
 0x42b   : >> { %v919_v2 = vmul.f32 %v840_v29, %v1782_v38  ;;  %v959_v3 = vmul.f32 %v840_v29, %v1795_v42 }
 0x42c   : >> { %827 = vrot.lane.b32.xlu1 %v818_v39, %s1610_s12 }
 0x42d   : >> { %v842_v63 = vld [vmem:[#allocation2 + $0x18] sm:$0xff] }
 0x42e   : >> { %875 = vrot.lane.b32.xlu0 %v866_v62, %s1609_s11  ;;  %916 = vst.msk [vmem:[#allocation3 + $0x48] sm:$0xff] %vm479_vm4, %v842_v63  ;;  %v820_v0 = vmul.f32 %v842_v63, %v1759_v30  ;;  %v933_v30 = vmul.f32 %v840_v29, %v1793_v41 }
 0x430   : >> { %877 = vrot.lane.b32.xlu1 %v1802_v44, %s1609_s11  ;;  %v868_v44 = vmul.f32 %v842_v63, %v1772_v34 }
 0x432   : >> { %853 = vrot.lane.b32.xlu0 %v842_v63, %s1611_s13  ;;  %s1963_s13 = scalar_lea.vmem %s2086_s5, %s1395_s15 }
 0x434   : >> { %899 = vrot.lane.b32.xlu1 %v1812_v48, %s1608_s10  ;;  %v894_v48 = vmul.f32 %v842_v63, %v1767_v33  ;;  %v934_v33 = vmul.f32 %v842_v63, %v1793_v41  ;;  %v805_v41 = vld [vmem:[%s1963_s13 + $0x8] sm:$0xff] }
 0x435   : >> { %1385 = vmatprep.mubr.msk.f32.mxu1 %vm479_vm4, %v805_v41  ;;  %v980_v39 = vld [vmem:[#allocation3 + $0x48] sm:$0xff] }
 0x436   : >> { %831 = vrot.lane.b32.xlu0 %v820_v0, %s1610_s12  ;;  %s808_s12 = scalar_lea.vmem %s2087_s6, %s1381_s19 }
 0x437   : >> { %v809_v34 = vld [vmem:[%s808_s12] sm:$0xff]  ;;  %v810_v4 = vld [vmem:[%s808_s12 + $0x8] sm:$0xff] }
 0x438   : >> { %903 = vrot.lane.b32.xlu1 %v1824_v53, %s1608_s10  ;;  %v920_v53 = vmul.f32 %v842_v63, %v1782_v38  ;;  %v960_v38 = vmul.f32 %v842_v63, %v1795_v42 }
 0x43a   : >> { %901 = vrot.lane.b32.xlu0 %v892_v1, %s1608_s10 }
 0x43c   : >> { %923 = vrot.lane.b32.xlu1 %v919_v2, %s1606_s28 }
 0x43e   : >> { %879 = vrot.lane.b32.xlu0 %v868_v44, %s1609_s11 }
 0x440   : >> { %937 = vrot.lane.b32.xlu1 %v933_v30, %s1607_s29 }
 0x442   : >> { %905 = vrot.lane.b32.xlu0 %v894_v48, %s1608_s10 }
 0x444   : >> { %949 = vrot.lane.b32.xlu1 %v840_v29, %s1613_s14 }
 0x446   : >> { %925 = vrot.lane.b32.xlu0 %v920_v53, %s1606_s28 }
 0x448   : >> { %963 = vrot.lane.b32.xlu1 %v959_v3, %s1605_s27 }
 0x44a   : >> { %939 = vrot.lane.b32.xlu0 %v934_v33, %s1607_s29 }
 0x44c   : >> { %991 = vperm.xlu1 %1560, %v809_v34  }
 0x44e   : >> { %951 = vrot.lane.b32.xlu0 %v842_v63, %s1613_s14  ;;  %v979_v63 = vld [vmem:[#allocation3 + $0x40] sm:$0xff] }
 0x44f   : >> { %v1493_v0 = vpack.c.bf16 %v980_v39, %v979_v63  ;;  %v1118_v39 = vld [vmem:[%s2089_s8 + $0x20] sm:$0xff] (%p462_p4) }
 0x450   : > { %1570 = vset.pattern.permute.xlu1 (%p462_p4), %v1604_v5 }
 0x452   : >> { %965 = vrot.lane.b32.xlu0 %v960_v38, %s1605_s27 }
 0x456   : >> { %996 = vperm.xlu0 %1559, %v810_v4  }
 0x45a   : > { %1569 = vset.pattern.permute.xlu0 (%p462_p4), %v1604_v5  ;;  %v1109_v5 = vld [vmem:[%s2088_s7 + $0x8] sm:$0xff] (%p462_p4) }
 0x49c   : >> { %v850_v42 = vpop.permute.xlu0 %849 }
 0x49d   : >> { %v855_v13 = vsel %vm529_vm5, %v848_v7, %v850_v42  ;;  %v804_v7 = vld [vmem:[%s1963_s13] sm:$0xff] }
 0x49e   : >> { %859 = vst.msk [vmem:[#allocation3 + $0x10] sm:$0xff] %vm479_vm4, %v855_v13  ;;  %v828_v14 = vpop.permute.xlu1 %827 }
 0x49f   : >> { %v833_v15 = vsel %vm506_vm6, %v826_v11, %v828_v14  ;;  %v806_v11 = vld [vmem:[%s1963_s13 + $0x10] sm:$0xff] }
 0x4a0   : >> { %837 = vst.msk [vmem:[#allocation3] sm:$0xff] %vm479_vm4, %v833_v15  ;;  %v876_v16 = vpop.permute.xlu0 %875 }
 0x4a1   : >> { %v881_v17 = vsel %vm560_vm7, %v874_v12, %v876_v16 }
 0x4a2   : >> { %885 = vst.msk [vmem:[#allocation3 + $0x20] sm:$0xff] %vm479_vm4, %v881_v17  ;;  %v878_v18 = vpop.permute.xlu1 %877 }
 0x4a4   : >> { %v854_v19 = vpop.permute.xlu0 %853 }
 0x4a5   : >> { %v856_v20 = vsel %vm529_vm5, %v852_v10, %v854_v19  ;;  %v973_v54 = vld [vmem:[#allocation3 + $0x10] sm:$0xff]  ;;  %v807_v10 = vld [vmem:[%s1963_s13 + $0x18] sm:$0xff] }
 0x4a6   : >> { %860 = vst.msk [vmem:[#allocation3 + $0x18] sm:$0xff] %vm479_vm4, %v856_v20  ;;  %v900_v21 = vpop.permute.xlu1 %899 }
 0x4a7   : >> { %v971_v45 = vld [vmem:[#allocation3] sm:$0xff] }
 0x4a8   : >> { %v832_v22 = vpop.permute.xlu0 %831 }
 0x4a9   : >> { %v834_v24 = vsel %vm506_vm6, %v830_v6, %v832_v22  ;;  %v975_v58 = vld [vmem:[#allocation3 + $0x20] sm:$0xff] }
 0x4aa   : >> { %838 = vst.msk [vmem:[#allocation3 + $0x8] sm:$0xff] %vm479_vm4, %v834_v24  ;;  %v904_v26 = vpop.permute.xlu1 %903 }
 0x4ac   : >> { %v902_v27 = vpop.permute.xlu0 %901 }
 0x4ad   : >> { %v907_v32 = vsel %vm590_vm8, %v900_v21, %v902_v27  ;;  %v974_v50 = vld [vmem:[#allocation3 + $0x18] sm:$0xff] }
 0x4ae   : >> { %911 = vst.msk [vmem:[#allocation3 + $0x30] sm:$0xff] %vm479_vm4, %v907_v32  ;;  %v924_v37 = vpop.permute.xlu1 %923  ;;  %v1484_v56 = vpack.c.bf16 %v974_v50, %v973_v54 }
 0x4af   : >> { %929 = vst.msk [vmem:[#allocation3 + $0x50] sm:$0xff] %vm479_vm4, %v924_v37 }
 0x4b0   : >> { %v880_v40 = vpop.permute.xlu0 %879 }
 0x4b1   : >> { %v882_v43 = vsel %vm560_vm7, %v878_v18, %v880_v40  ;;  %v972_v46 = vld [vmem:[#allocation3 + $0x8] sm:$0xff] }
 0x4b2   : >> { %886 = vst.msk [vmem:[#allocation3 + $0x28] sm:$0xff] %vm479_vm4, %v882_v43  ;;  %v938_v47 = vpop.permute.xlu1 %937  ;;  %v1481_v49 = vpack.c.bf16 %v972_v46, %v971_v45 }
 0x4b3   : >> { %943 = vst.msk [vmem:[#allocation3 + $0x60] sm:$0xff] %vm479_vm4, %v938_v47 }
 0x4b4   : >> { %v906_v51 = vpop.permute.xlu0 %905  ;;  %1482 = vmatpush1.bf16.msra.mxu1 %v1481_v49 }
 0x4b5   : >> { %v908_v52 = vsel %vm590_vm8, %v904_v26, %v906_v51  ;;  %1483 = vmatprep.subr.bf16.mxu1 %v1612_v35  ;;  %v977_v31 = vld [vmem:[#allocation3 + $0x30] sm:$0xff] }
 0x4b6   : >> { %912 = vst.msk [vmem:[#allocation3 + $0x38] sm:$0xff] %vm479_vm4, %v908_v52  ;;  %v950_v55 = vpop.permute.xlu1 %949  ;;  %v981_v44 = vld [vmem:[#allocation3 + $0x50] sm:$0xff] }
 0x4b7   : >> { %955 = vst.msk [vmem:[#allocation3 + $0x70] sm:$0xff] %vm479_vm4, %v950_v55 }
 0x4b8   : >> { %v926_v57 = vpop.permute.xlu0 %925  ;;  %1485 = vmatpush1.bf16.msra.mxu1 %v1484_v56 }
 0x4b9   : >> { %930 = vst.msk [vmem:[#allocation3 + $0x58] sm:$0xff] %vm479_vm4, %v926_v57  ;;  %1486 = vmatprep.subr.bf16.mxu1 %v1612_v35  ;;  %v976_v59 = vld [vmem:[#allocation3 + $0x28] sm:$0xff] }
 0x4ba   : >> { %v964_v60 = vpop.permute.xlu1 %963  ;;  %v1487_v36 = vpack.c.bf16 %v976_v59, %v975_v58  ;;  %v983_v53 = vld [vmem:[#allocation3 + $0x60] sm:$0xff] }
 0x4bb   : >> { %969 = vst.msk [vmem:[#allocation3 + $0x80] sm:$0xff] %vm479_vm4, %v964_v60  ;;  %v1108_v60 = vld [vmem:[%s2088_s7] sm:$0xff] (%p462_p4) }
 0x4bc   : >> { %v940_v61 = vpop.permute.xlu0 %939  ;;  %1488 = vmatpush1.bf16.msra.mxu1 %v1487_v36  ;;  %1432 = vmatprep.mubr.msk.f32.mxu0 (%p462_p4), %vm479_vm4, %v1108_v60  ;;  %v1112_v36 = vld [vmem:[%s2088_s7 + $0x20] sm:$0xff] (%p462_p4) }
 0x4bd   : >> { %944 = vst.msk [vmem:[#allocation3 + $0x68] sm:$0xff] %vm479_vm4, %v940_v61  ;;  %1489 = vmatprep.subr.bf16.mxu1 %v1612_v35  ;;  %v978_v28 = vld [vmem:[#allocation3 + $0x38] sm:$0xff] }
 0x4be   : >> { %v1490_v29 = vpack.c.bf16 %v978_v28, %v977_v31  ;;  %v985_v34 = vld [vmem:[#allocation3 + $0x70] sm:$0xff]  ;;  %v1117_v61 = vld [vmem:[%s2089_s8 + $0x18] sm:$0xff] (%p462_p4)  ;;  %v1115_v31 = vld [vmem:[%s2089_s8 + $0x8] sm:$0xff] (%p462_p4) }
 0x4bf   : > { %v1113_v28 = vld [vmem:[%s2088_s7 + $0x28] sm:$0xff] (%p462_p4) }
 0x4c0   : >> { %v952_v62 = vpop.permute.xlu0 %951  ;;  %1491 = vmatpush1.bf16.msra.mxu1 %v1490_v29  ;;  %v982_v1 = vld [vmem:[#allocation3 + $0x58] sm:$0xff]  ;;  %v1119_v29 = vld [vmem:[%s2089_s8 + $0x28] sm:$0xff] (%p462_p4) }
 0x4c1   : >> { %956 = vst.msk [vmem:[#allocation3 + $0x78] sm:$0xff] %vm479_vm4, %v952_v62  ;;  %1492 = vmatprep.subr.bf16.mxu1 %v1612_v35  ;;  %v1496_v30 = vpack.c.bf16 %v982_v1, %v981_v44  ;;  %v1265_v44 = vld [vmem:[%s1687_s20 + $0x8] sm:$0xff] (%p462_p4) }
 0x4c2   : >> { %v987_v41 = vld [vmem:[#allocation3 + $0x80] sm:$0xff] }
 0x4c4   : >> { %v966_v2 = vpop.permute.xlu0 %965  ;;  %1494 = vmatpush1.bf16.msra.mxu1 %v1493_v0  ;;  %v984_v48 = vld [vmem:[#allocation3 + $0x68] sm:$0xff] }
 0x4c5   : >> { %970 = vst.msk [vmem:[#allocation3 + $0x88] sm:$0xff] %vm479_vm4, %v966_v2  ;;  %1495 = vmatprep.subr.bf16.mxu1 %v1612_v35  ;;  %v1499_v3 = vpack.c.bf16 %v984_v48, %v983_v53  ;;  %v1267_v48 = vld [vmem:[%s1687_s20 + $0x18] sm:$0xff] (%p462_p4) }
 0x4c8   : >> { %1497 = vmatpush1.bf16.msra.mxu1 %v1496_v30  ;;  %v986_v33 = vld [vmem:[#allocation3 + $0x78] sm:$0xff] }
 0x4c9   : >> { %1498 = vmatprep.subr.bf16.mxu1 %v1612_v35  ;;  %v1502_v38 = vpack.c.bf16 %v986_v33, %v985_v34  ;;  %v1264_v34 = vld [vmem:[%s1687_s20] sm:$0xff] (%p462_p4) }
 0x4cb   : >> { %v992_v12 = vpop.permute.xlu1 %991 }
 0x4cc   : >> { %1500 = vmatpush1.bf16.msra.mxu1 %v1499_v3  ;;  %v988_v4 = vld [vmem:[#allocation3 + $0x88] sm:$0xff] }
 0x4cd   : >> { %1501 = vmatprep.subr.bf16.mxu1 %v1612_v35  ;;  %v1505_v6 = vpack.c.bf16 %v988_v4, %v987_v41  ;;  %v1266_v4 = vld [vmem:[%s1687_s20 + $0x10] sm:$0xff] (%p462_p4) }
 0x4d0   : >> { %1503 = vmatpush1.bf16.msra.mxu1 %v1502_v38 }
 0x4d1   : >> { %1504 = vmatprep.subr.bf16.mxu1 %v1612_v35 }
 0x4d4   : >> { %1506 = vmatpush1.bf16.msra.mxu1 %v1505_v6 }
 0x4d5   : >> { %v997_v16 = vpop.permute.xlu0 %996 }
 0x4d7   : >> { %1070 = vmatmul.mubr.f32.vlgmr.msra.gmra.mrb[0].mxu1 %v804_v7 }
 0x4d8   : >> { %1386 = vmatprep.mubr.msk.f32.mxu1 %vm479_vm4, %v807_v10 }
 0x4db   : >> { %1075 = vmatmul.mubr.f32.gmra.mrb[2].mxu1 %v806_v11 }
 0x5aa   : >> { %v1071_v42 = vpop.f32.mrb[0].mxu1 }
 0x5ab   : >> { %v1072_v13 = vadd.f32 %v1071_v42, %v992_v12  ;;  %v1073_v14 = vpop.f32.mrb[1].mxu1 }
 0x5ac   : > { %v1269_v14 = vld [vmem:[%s1687_s20 + $0x28] sm:$0xff] (%p462_p4) }
 0x5ad   : >> { %v1080_v15 = vsel %vm479_vm4, %v1072_v13, 0.0 }
 0x5ae   : >> { %v1076_v17 = vpop.f32.mrb[2].mxu1  ;;  %1081 = vadd.xlane.f32.xlu1 %v1080_v15 }
 0x5af   : >> { %v1077_v35 = vadd.f32 %v1076_v17, %v997_v16  ;;  %v1078_v18 = vpop.f32.mrb[3].mxu1 }
 0x5b1   : >> { %v1083_v19 = vsel %vm479_vm4, %v1077_v35, 0.0 }
 0x5b2   : >> { %1084 = vadd.xlane.f32.xlu0 %v1083_v19  ;;  %v1268_v19 = vld [vmem:[%s1687_s20 + $0x20] sm:$0xff] (%p462_p4) }
 0x63b   : >> { %v1082_v20 = vpop.xlane.xlu1 %1081 }
 0x63c   : >> { %v1086_v21 = vmul.f32 0.0625, %v1082_v20 }
 0x63e   : >> { %v1088_v22 = vsub.f32 %v1072_v13, %v1086_v21 }
 0x63f   : >> { %v1085_v24 = vpop.xlane.xlu0 %1084 }
 0x640   : >> { %v1087_v26 = vmul.f32 0.0625, %v1085_v24  ;;  %v1090_v27 = vmul.f32 %v1088_v22, %v1088_v22 }
 0x642   : >> { %v1089_v32 = vsub.f32 %v1077_v35, %v1087_v26  ;;  %v1092_v37 = vsel %vm479_vm4, %v1090_v27, 0.0 }
 0x643   : >> { %1093 = vadd.xlane.f32.xlu0 %v1092_v37 }
 0x644   : >> { %v1091_v40 = vmul.f32 %v1089_v32, %v1089_v32 }
 0x646   : >> { %v1095_v43 = vsel %vm479_vm4, %v1091_v40, 0.0 }
 0x647   : >> { %1096 = vadd.xlane.f32.xlu1 %v1095_v43 }
 0x658   : > { %1132 = vperm.xlu1 (%p462_p4), %1570, %v1116_v8  }
 0x659   : > { %1122 = vperm.xlu0 (%p462_p4), %1569, %v1114_v9  }
 0x65c   : > { %1137 = vperm.xlu1 (%p462_p4), %1570, %v1117_v61  }
 0x65d   : > { %1127 = vperm.xlu0 (%p462_p4), %1569, %v1115_v31  }
 0x660   : > { %1147 = vperm.xlu1 (%p462_p4), %1570, %v1119_v29  }
 0x661   : > { %1142 = vperm.xlu0 (%p462_p4), %1569, %v1118_v39  }
 0x6d0   : >> { %v1094_v45 = vpop.xlane.xlu0 %1093 }
 0x6d1   : >> { %v1098_v46 = vmul.f32 0.0625, %v1094_v45 }
 0x6d3   : >> { %v1100_v47 = vadd.f32 1e-05, %v1098_v46 }
 0x6d4   : >> { %v1097_v49 = vpop.xlane.xlu1 %1096 }
 0x6d5   : >> { %1565 = vrsqrt.f32 %v1100_v47  ;;  %v1099_v50 = vmul.f32 0.0625, %v1097_v49 }
 0x6d7   : >> { %v1101_v51 = vadd.f32 1e-05, %v1099_v50 }
 0x6d8   : > { %v1133_v62 = vpop.permute.xlu1 (%p462_p4), %1132  ;;  %v1123_v63 = vpop.permute.xlu0 (%p462_p4), %1122 }
 0x6d9   : >> { %1567 = vrsqrt.f32 %v1101_v51 }
 0x6dc   : > { %v1138_v0 = vpop.permute.xlu1 (%p462_p4), %1137  ;;  %v1128_v1 = vpop.permute.xlu0 (%p462_p4), %1127 }
 0x6df   : >> { %v1566_v52 = vpop.eup %1565 }
 0x6e0   : >> { %v1104_v54 = vmul.f32 %v1566_v52, %v1088_v22  ;;  %v1148_v11 = vpop.permute.xlu1 (%p462_p4), %1147  ;;  %v1143_v15 = vpop.permute.xlu0 (%p462_p4), %1142 }
 0x6e2   : >> { %v1106_v55 = vadd.f32 %v1597_v25, %v1104_v54   ;;  %464 = sbr.rel (!%p462_p4) target bundleno = 246 (0xf6), region = 97 }
 0x6e3   : >> { %v1568_v56 = vpop.eup %1567 }
 0x6e4   : >> { %v1105_v57 = vmul.f32 %v1568_v56, %v1089_v32  ;;  %v2092_v25 = vmov %v1106_v55 }
 0x6e5   : > { %v1110_v25 = vld [vmem:[%s2088_s7 + $0x10] sm:$0xff] (%p462_p4) }
 0x6e6   : >> { %v1107_v58 = vadd.f32 %v1593_v23, %v1105_v57   ;;  %1435 = vmatprep.mubr.msk.f32.mxu1 (%p462_p4), %vm479_vm4, %v1110_v25 }
 0x6e8   : >> { %v2091_v23 = vmov %v1107_v58  ;;  %v1507_v59 = vpack.c.bf16 (%p462_p4), %v1107_v58, %v1106_v55 }
 0x6e9   : > { %v1111_v23 = vld [vmem:[%s2088_s7 + $0x18] sm:$0xff] }
 0x6ea   : > { %1508 = vmatprep.subr.bf16.mxu0 %v1507_v59  ;;  %1511 = vmatprep.subr.bf16.mxu1 %v1507_v59 }
 0x6eb   : > { %1510 = vmatpush3.bf16.msra.mxu0 %v1507_v59  ;;  %1512 = vmatpush3.bf16.msra.mxu1 %v1507_v59 }
 0x6ee   : > { %1433 = vmatmul.mubr.msk.f32.vlgmr.msra.gmra.mrb[0].mxu0 %vm479_vm4, %v1109_v5  ;;  %1436 = vmatmul.mubr.msk.f32.vlgmr.msra.gmra.mrb[0].mxu1 %vm479_vm4, %v1111_v23 }
 0x6ef   : > { %1438 = vmatprep.mubr.msk.f32.mxu1 %vm479_vm4, %v1112_v36 }
 0x6f2   : > { %1439 = vmatmul.mubr.msk.f32.gmra.mrb[2].mxu1 %vm479_vm4, %v1113_v28 }
 0x7c1   : > { %v1434_v2 = vpop.f32.mrb[0].mxu0  ;;  %v1437_v30 = vpop.f32.mrb[0].mxu1 }
 0x7c2   : > { %v1241_v53 = vadd.f32 %v1434_v2, %v1128_v1  ;;  %v1251_v3 = vadd.f32 %v1437_v30, %v1138_v0  ;;  %v1235_v33 = vpop.f32.mrb[1].mxu0  ;;  %v1245_v38 = vpop.f32.mrb[1].mxu1 }
 0x7c3   : > { %v1236_v41 = vadd.f32 %v1235_v33, %v1123_v63  ;;  %v1246_v6 = vadd.f32 %v1245_v38, %v1133_v62 }
 0x7c4   : > { %v1271_v7 = vadd.f32 %v1265_v44, %v1241_v53  ;;  %v1273_v10 = vadd.f32 %v1267_v48, %v1251_v3 }
 0x7c5   : > { %v1270_v12 = vadd.f32 %v1264_v34, %v1236_v41  ;;  %v1272_v42 = vadd.f32 %v1266_v4, %v1246_v6  ;;  %v1440_v13 = vpop.f32.mrb[2].mxu1 }
 0x7c6   : > { %v1277_v16 = vmax.f32 %v1271_v7, 0.0  ;;  %v1279_v17 = vmax.f32 %v1273_v10, 0.0  ;;  %v1261_v35 = vadd.f32 %v1440_v13, %v1148_v11  ;;  %v1255_v18 = vpop.f32.mrb[3].mxu1 }
 0x7c7   : > { %v1276_v20 = vmax.f32 %v1270_v12, 0.0  ;;  %v1278_v21 = vmax.f32 %v1272_v42, 0.0  ;;  %v1256_v22 = vadd.f32 %v1255_v18, %v1143_v15 }
 0x7c8   : > { %v1283_v24 = vmin.f32 %v1277_v16, 1.0  ;;  %v1285_v26 = vmin.f32 %v1279_v17, 1.0  ;;  %v1275_v27 = vadd.f32 %v1269_v14, %v1261_v35 }
 0x7c9   : > { %v1282_v32 = vmin.f32 %v1276_v20, 1.0  ;;  %v1284_v37 = vmin.f32 %v1278_v21, 1.0  ;;  %v1274_v40 = vadd.f32 %v1268_v19, %v1256_v22 }
 0x7ca   : > { %1289 = vst.msk [vmem:[%s1692_s23 + $0x8] sm:$0xff] %vm479_vm4, %v1283_v24  ;;  %1291 = vst.msk [vmem:[%s1692_s23 + $0x18] sm:$0xff] %vm479_vm4, %v1285_v26  ;;  %v1281_v43 = vmax.f32 %v1275_v27, 0.0 }
 0x7cb   : > { %1288 = vst.msk [vmem:[%s1692_s23] sm:$0xff] %vm479_vm4, %v1282_v32  ;;  %1290 = vst.msk [vmem:[%s1692_s23 + $0x10] sm:$0xff] %vm479_vm4, %v1284_v37  ;;  %v1280_v45 = vmax.f32 %v1274_v40, 0.0 }
 0x7cc   : > { %v1287_v46 = vmin.f32 %v1281_v43, 1.0 }
 0x7cd   : > { %v1286_v47 = vmin.f32 %v1280_v45, 1.0 }
 0x7ce   : > { %1293 = vst.msk [vmem:[%s1692_s23 + $0x28] sm:$0xff] %vm479_vm4, %v1287_v46 }
 0x7cf   : > { %1292 = vst.msk [vmem:[%s1692_s23 + $0x20] sm:$0xff] %vm479_vm4, %v1286_v47 }
 0x7d0 PF: > { %s19_s30 = sadd.s32 1, %s1589_s30  }
 0x7d1   : > { %p16_p5 = scmp.ge.s32.totalorder %s19_s30, 4  }
 0x7d3   :  { %18 = sbr.rel (!%p16_p5) target bundleno = 1 (0x1), region = 108 }

</bundles_post_ra>
